<compile_context>
chip_gen: v7x
topology: tpu7x:2x2x1
jax: 0.10.0
libtpu: 0.0.40
codegen_flags: <defaults>
</compile_context>

<pallas_src>
import math

import jax
import jax.numpy as jnp
from jax.experimental import pallas as pl
from jax.experimental.pallas import tpu as pltpu

LANE = 128


def _round_up(n, m):
    return ((n + m - 1) // m) * m


def _pad2d(a, rows, cols):
    pr, pc = rows - a.shape[0], cols - a.shape[1]
    if pr == 0 and pc == 0:
        return a  # skip the extra HBM pass when already aligned
    return jnp.pad(a, ((0, pr), (0, pc)))


def make_vade_kernel(n_enc, n_dec, lat_p):
    """Fused VADE forward for one batch tile.

    Ref order (inputs then outputs):
      x, eps,
      enc  (W_i, b_i) * n_enc          -- ReLU after all but the last
      W_mulogvar, b_mulogvar           -- fused mu/logvar head (split at lat_p)
      dec  (W_j, b_j) * n_dec          -- decoder_latent + first decoder Linear
                                          pre-fused in wrapper; ReLU before dec[j] for j >= 1
      outputs: x_recon, mu, logvar
    """

    def kernel(*refs):
        idx = 0
        x_ref = refs[idx]; idx += 1
        eps_ref = refs[idx]; idx += 1
        enc = [(refs[idx + 2 * i], refs[idx + 2 * i + 1]) for i in range(n_enc)]
        idx += 2 * n_enc
        wml_ref, bml_ref = refs[idx], refs[idx + 1]
        idx += 2
        dec = [(refs[idx + 2 * j], refs[idx + 2 * j + 1]) for j in range(n_dec)]
        idx += 2 * n_dec
        xrec_ref, mu_ref, logvar_ref = refs[idx:idx + 3]

        # --- encoder MLP (MXU matmuls, ReLU between layers, none after last) ---
        h = x_ref[...].astype(jnp.float32)
        for i, (w_ref, b_ref) in enumerate(enc):
            h = jnp.dot(h, w_ref[...], preferred_element_type=jnp.float32) + b_ref[...]
            if i != n_enc - 1:
                h = jnp.maximum(h, 0.0)

        # --- fused mu/logvar head: one wide matmul, lane-aligned split ---
        ml = jnp.dot(h, wml_ref[...], preferred_element_type=jnp.float32) + bml_ref[...]
        mu = ml[:, :lat_p]
        logvar = ml[:, lat_p:]
        z = mu + eps_ref[...].astype(jnp.float32) * jnp.exp(0.5 * logvar)

        # --- decoder: fused (decoder_latent . first Linear), then [ReLU, Linear]* ---
        d = z
        for j, (w_ref, b_ref) in enumerate(dec):
            if j >= 1:
                d = jnp.maximum(d, 0.0)
            d = jnp.dot(d, w_ref[...], preferred_element_type=jnp.float32) + b_ref[...]

        xrec_ref[...] = d.astype(xrec_ref.dtype)
        mu_ref[...] = mu
        logvar_ref[...] = logvar

    return kernel


def _choose_tile_b(B, tile_b_max):
    n_tiles = max(1, pl.cdiv(B, tile_b_max))
    # Give v7x's second TensorCore work (>=2 grid steps) once B is big enough.
    if B >= 64:
        n_tiles = max(n_tiles, 2)
    # Even tile sizing bounds last-tile padding waste to < 8 rows per tile.
    return max(8, _round_up(pl.cdiv(B, n_tiles), 8))


def vade_forward(x_nchw, params, eps, output_shape, tile_b_max=256, stream_bf16=False):
    """Pallas VADE forward. params = {'enc': [(W,b),...], 'fc_mu': (W,b),
    'fc_logvar': (W,b), 'dec': [(W,b),...]} with unpadded f32 arrays (W as (in, out))."""
    f32 = jnp.float32
    B = x_nchw.shape[0]
    x2d = x_nchw.reshape(B, -1).astype(f32)
    din = x2d.shape[1]
    latent = params["fc_mu"][0].shape[1]
    dout = params["dec"][-1][0].shape[1]

    tile_b = _choose_tile_b(B, tile_b_max)
    b_pad = _round_up(B, tile_b)
    din_p = _round_up(din, LANE)
    lat_p = _round_up(latent, LANE)
    dout_p = _round_up(dout, LANE)

    act_dtype = jnp.bfloat16 if stream_bf16 else f32
    x_p = _pad2d(x2d, b_pad, din_p).astype(act_dtype)
    eps_p = _pad2d(eps.astype(f32), b_pad, lat_p).astype(act_dtype)

    def pad_linear(w, b):
        w = w.astype(f32)
        b = b.astype(f32).reshape(1, -1)
        wp = _pad2d(w, _round_up(w.shape[0], LANE), _round_up(w.shape[1], LANE))
        bp = _pad2d(b, 1, _round_up(b.shape[1], LANE))
        return wp, bp

    # Encoder weights.
    enc_p = [pad_linear(w, b) for (w, b) in params["enc"]]

    # Fused mu/logvar head: one (hidden_p, 2*lat_p) weight; split in-kernel at lat_p.
    wmu, bmu = params["fc_mu"]
    wlv, blv = params["fc_logvar"]
    hid_p = _round_up(wmu.shape[0], LANE)
    w_ml = jnp.concatenate(
        [_pad2d(wmu.astype(f32), hid_p, lat_p), _pad2d(wlv.astype(f32), hid_p, lat_p)],
        axis=1)
    b_ml = jnp.concatenate(
        [_pad2d(bmu.astype(f32).reshape(1, -1), 1, lat_p),
         _pad2d(blv.astype(f32).reshape(1, -1), 1, lat_p)],
        axis=1)

    # Fold decoder_latent into the first DecoderBlock Linear (no ReLU between them):
    #   z@W0+b0 then @W1+b1  ==  z@(W0@W1) + (b0@W1 + b1)
    dec_raw = [(w.astype(f32), b.astype(f32)) for (w, b) in params["dec"]]
    if len(dec_raw) >= 2:
        (w0, b0), (w1, b1) = dec_raw[0], dec_raw[1]
        dec_fused = [(w0 @ w1, b0 @ w1 + b1)] + dec_raw[2:]
    else:
        dec_fused = dec_raw
    dec_p = [pad_linear(w, b) for (w, b) in dec_fused]

    weights = []
    for wp, bp in enc_p:
        weights += [wp, bp]
    weights += [w_ml, b_ml]
    for wp, bp in dec_p:
        weights += [wp, bp]

    n_enc, n_dec = len(enc_p), len(dec_p)
    grid = (b_pad // tile_b,)

    def batch_spec(ncols):
        return pl.BlockSpec((tile_b, ncols), lambda i: (i, 0))

    def resident_spec(arr):
        # Constant index_map => never re-DMA'd per batch tile; Buffered(1) drops the
        # useless second buffer and halves resident-weight VMEM.
        return pl.BlockSpec(arr.shape, lambda i: (0, 0), pipeline_mode=pl.Buffered(1))

    in_specs = [batch_spec(din_p), batch_spec(lat_p)] + [resident_spec(a) for a in weights]
    out_specs = [batch_spec(dout_p), batch_spec(lat_p), batch_spec(lat_p)]
    out_shape = [
        jax.ShapeDtypeStruct((b_pad, dout_p), act_dtype),
        jax.ShapeDtypeStruct((b_pad, lat_p), f32),
        jax.ShapeDtypeStruct((b_pad, lat_p), f32),
    ]

    # Explicit VMEM budget: 1x resident weights + 2x (double-buffered) streamed tiles.
    def nbytes(a):
        return int(a.size) * a.dtype.itemsize

    weight_bytes = sum(nbytes(a) for a in weights)
    act_size = jnp.dtype(act_dtype).itemsize
    stream_bytes = (
        tile_b * din_p * act_size        # x tile
        + tile_b * lat_p * act_size      # eps tile
        + tile_b * dout_p * act_size     # x_recon tile
        + 2 * tile_b * lat_p * 4         # mu, logvar tiles (f32)
    )
    vmem_needed = weight_bytes + 2 * stream_bytes
    vmem_limit = int(min(128 * 2**20, max(32 * 2**20, int(1.5 * vmem_needed) + (2 << 20))))

    # TODO(synk): for Din large enough that W_enc0 / W_dec_last no longer fit resident,
    # add a trailing "arbitrary" Din-reduction grid axis with an f32 VMEM accumulator,
    # choosing the split threshold from pltpu.get_tpu_info().vmem_capacity_bytes
    # (v7x has half the per-TC VMEM of v5e/v6e).

    xrec_p, mu_pad, lv_pad = pl.pallas_call(
        make_vade_kernel(n_enc, n_dec, lat_p),
        out_shape=out_shape,
        grid=grid,
        in_specs=in_specs,
        out_specs=out_specs,
        compiler_params=pltpu.CompilerParams(
            dimension_semantics=("parallel",),
            vmem_limit_bytes=vmem_limit,
        ),
    )(x_p, eps_p, *weights)

    x_recon = xrec_p[:B, :dout].astype(f32).reshape((B,) + tuple(output_shape))
    mu = mu_pad[:B, :latent]
    logvar = lv_pad[:B, :latent]
    return x_recon, mu, logvar


def reference_forward(x_nchw, params, eps, output_shape):
    """Pure-JAX mirror of the PyTorch VADE.forward (no fusion tricks)."""
    B = x_nchw.shape[0]
    h = x_nchw.reshape(B, -1).astype(jnp.float32)
    enc = params["enc"]
    for i, (w, b) in enumerate(enc):
        h = h @ w + b
        if i != len(enc) - 1:
            h = jnp.maximum(h, 0.0)
    mu = h @ params["fc_mu"][0] + params["fc_mu"][1]
    logvar = h @ params["fc_logvar"][0] + params["fc_logvar"][1]
    z = mu + eps * jnp.exp(0.5 * logvar)
    d = z
    for j, (w, b) in enumerate(params["dec"]):
        if j >= 2:
            d = jnp.maximum(d, 0.0)
        d = d @ w + b
    return d.reshape((B,) + tuple(output_shape)), mu, logvar


def _init_linear(key, din, dout):
    kw, kb = jax.random.split(key)
    scale = 1.0 / math.sqrt(din)
    w = jax.random.uniform(kw, (din, dout), jnp.float32, -scale, scale)
    b = jax.random.uniform(kb, (dout,), jnp.float32, -scale, scale)
    return w, b


if __name__ == "__main__":
    # Small shapes consistent with the module's forward.
    B, C, H, W = 2, 4, 16, 16
    Din = C * H * W
    latent_dim = 32
    channel_dims = [Din, 128, 64]           # encoder MLP widths
    output_shape = (C, H, W)                # nn.Unflatten target

    key = jax.random.PRNGKey(0)
    keys = jax.random.split(key, 10)

    # Encoder: Linear(1024,128) -> ReLU -> Linear(128,64)
    enc = [
        _init_linear(keys[0], channel_dims[0], channel_dims[1]),
        _init_linear(keys[1], channel_dims[1], channel_dims[2]),
    ]
    fc_mu = _init_linear(keys[2], channel_dims[-1], latent_dim)
    fc_logvar = _init_linear(keys[3], channel_dims[-1], latent_dim)
    # Decode path: decoder_latent(32->64), Linear(64->128), ReLU, Linear(128->1024)
    dec_dims = channel_dims[::-1]           # [64, 128, 1024]
    dec = [
        _init_linear(keys[4], latent_dim, dec_dims[0]),
        _init_linear(keys[5], dec_dims[0], dec_dims[1]),
        _init_linear(keys[6], dec_dims[1], dec_dims[2]),
    ]
    params = {"enc": enc, "fc_mu": fc_mu, "fc_logvar": fc_logvar, "dec": dec}

    x = jax.random.normal(keys[7], (B, C, H, W), dtype=jnp.float32)
    # Reparametrization noise (eps ~ N(0,1)), supplied externally for determinism.
    eps = jax.random.normal(keys[8], (B, latent_dim), dtype=jnp.float32)

    x_recon, mu, logvar = vade_forward(x, params, eps, output_shape)
    x_recon = jax.block_until_ready(x_recon)

    x_ref, mu_ref, lv_ref = reference_forward(x, params, eps, output_shape)

    assert x_recon.shape == (B,) + output_shape
    assert mu.shape == (B, latent_dim) and logvar.shape == (B, latent_dim)
    assert jnp.allclose(x_recon, x_ref, atol=1e-4, rtol=1e-4)
    assert jnp.allclose(mu, mu_ref, atol=1e-4, rtol=1e-4)
    assert jnp.allclose(logvar, lv_ref, atol=1e-4, rtol=1e-4)

    print("KERNEL_OK")
</pallas_src>

<mosaic_0001>
module attributes {stable_mosaic.version = 11 : i64} {
  func.func @kernel(%arg0: i32, %arg1: memref<8x1024xf32, #tpu.memory_space<vmem>>, %arg2: memref<8x128xf32, #tpu.memory_space<vmem>>, %arg3: memref<1024x128xf32, #tpu.memory_space<vmem>>, %arg4: memref<1x128xf32, #tpu.memory_space<vmem>>, %arg5: memref<128x128xf32, #tpu.memory_space<vmem>>, %arg6: memref<1x128xf32, #tpu.memory_space<vmem>>, %arg7: memref<128x256xf32, #tpu.memory_space<vmem>>, %arg8: memref<1x256xf32, #tpu.memory_space<vmem>>, %arg9: memref<128x128xf32, #tpu.memory_space<vmem>>, %arg10: memref<1x128xf32, #tpu.memory_space<vmem>>, %arg11: memref<128x1024xf32, #tpu.memory_space<vmem>>, %arg12: memref<1x1024xf32, #tpu.memory_space<vmem>>, %arg13: memref<8x1024xf32, #tpu.memory_space<vmem>>, %arg14: memref<8x128xf32, #tpu.memory_space<vmem>>, %arg15: memref<8x128xf32, #tpu.memory_space<vmem>>) attributes {dimension_semantics = [#tpu.dimension_semantics<parallel>], iteration_bounds = array<i64: 1>, scalar_prefetch = 0 : i64, scratch_operands = 0 : i64, tpu.core_type = #tpu.core_type<tc>, window_params = [{transform_indices = @transform_0, window_bounds = array<i64: 8, 1024>}, {transform_indices = @transform_1, window_bounds = array<i64: 8, 128>}, {pipeline_mode = #tpu.pipeline_mode<synchronous>, transform_indices = @transform_2, window_bounds = array<i64: 1024, 128>}, {pipeline_mode = #tpu.pipeline_mode<synchronous>, transform_indices = @transform_3, window_bounds = array<i64: 1, 128>}, {pipeline_mode = #tpu.pipeline_mode<synchronous>, transform_indices = @transform_4, window_bounds = array<i64: 128, 128>}, {pipeline_mode = #tpu.pipeline_mode<synchronous>, transform_indices = @transform_5, window_bounds = array<i64: 1, 128>}, {pipeline_mode = #tpu.pipeline_mode<synchronous>, transform_indices = @transform_6, window_bounds = array<i64: 128, 256>}, {pipeline_mode = #tpu.pipeline_mode<synchronous>, transform_indices = @transform_7, window_bounds = array<i64: 1, 256>}, {pipeline_mode = #tpu.pipeline_mode<synchronous>, transform_indices = @transform_8, window_bounds = array<i64: 128, 128>}, {pipeline_mode = #tpu.pipeline_mode<synchronous>, transform_indices = @transform_9, window_bounds = array<i64: 1, 128>}, {pipeline_mode = #tpu.pipeline_mode<synchronous>, transform_indices = @transform_10, window_bounds = array<i64: 128, 1024>}, {pipeline_mode = #tpu.pipeline_mode<synchronous>, transform_indices = @transform_11, window_bounds = array<i64: 1, 1024>}, {transform_indices = @transform_12, window_bounds = array<i64: 8, 1024>}, {transform_indices = @transform_13, window_bounds = array<i64: 8, 128>}, {transform_indices = @transform_14, window_bounds = array<i64: 8, 128>}]} {
    %c0 = arith.constant 0 : index
    %c0_0 = arith.constant 0 : index
    %0 = vector.load %arg1[%c0, %c0_0] : memref<8x1024xf32, #tpu.memory_space<vmem>>, vector<8x1024xf32>
    %c0_1 = arith.constant 0 : index
    %c0_2 = arith.constant 0 : index
    %1 = vector.load %arg3[%c0_1, %c0_2] : memref<1024x128xf32, #tpu.memory_space<vmem>>, vector<1024x128xf32>
    %cst = arith.constant dense<0.000000e+00> : vector<8x128xf32>
    %2 = tpu.matmul %0, %1, %cst {dimension_numbers = #tpu.dot_dimension_numbers<[1], [0], [0], [1], [0, 0, 1, 1], [], []>} : vector<8x1024xf32>, vector<1024x128xf32>, vector<8x128xf32> -> vector<8x128xf32>
    %c0_3 = arith.constant 0 : index
    %c0_4 = arith.constant 0 : index
    %3 = vector.load %arg4[%c0_3, %c0_4] : memref<1x128xf32, #tpu.memory_space<vmem>>, vector<1x128xf32>
    %4 = vector.broadcast %3 : vector<1x128xf32> to vector<8x128xf32>
    %5 = arith.addf %2, %4 : vector<8x128xf32>
    %cst_5 = arith.constant 0.000000e+00 : f32
    %6 = vector.broadcast %cst_5 : f32 to vector<8x128xf32>
    %7 = arith.maximumf %5, %6 : vector<8x128xf32>
    %c0_6 = arith.constant 0 : index
    %c0_7 = arith.constant 0 : index
    %8 = vector.load %arg5[%c0_6, %c0_7] : memref<128x128xf32, #tpu.memory_space<vmem>>, vector<128x128xf32>
    %cst_8 = arith.constant dense<0.000000e+00> : vector<8x128xf32>
    %9 = tpu.matmul %7, %8, %cst_8 {dimension_numbers = #tpu.dot_dimension_numbers<[1], [0], [0], [1], [0, 0, 1, 1], [], []>} : vector<8x128xf32>, vector<128x128xf32>, vector<8x128xf32> -> vector<8x128xf32>
    %c0_9 = arith.constant 0 : index
    %c0_10 = arith.constant 0 : index
    %10 = vector.load %arg6[%c0_9, %c0_10] : memref<1x128xf32, #tpu.memory_space<vmem>>, vector<1x128xf32>
    %11 = vector.broadcast %10 : vector<1x128xf32> to vector<8x128xf32>
    %12 = arith.addf %9, %11 : vector<8x128xf32>
    %c0_11 = arith.constant 0 : index
    %c0_12 = arith.constant 0 : index
    %13 = vector.load %arg7[%c0_11, %c0_12] : memref<128x256xf32, #tpu.memory_space<vmem>>, vector<128x256xf32>
    %cst_13 = arith.constant dense<0.000000e+00> : vector<8x256xf32>
    %14 = tpu.matmul %12, %13, %cst_13 {dimension_numbers = #tpu.dot_dimension_numbers<[1], [0], [0], [1], [0, 0, 1, 1], [], []>} : vector<8x128xf32>, vector<128x256xf32>, vector<8x256xf32> -> vector<8x256xf32>
    %c0_14 = arith.constant 0 : index
    %c0_15 = arith.constant 0 : index
    %15 = vector.load %arg8[%c0_14, %c0_15] : memref<1x256xf32, #tpu.memory_space<vmem>>, vector<1x256xf32>
    %16 = vector.broadcast %15 : vector<1x256xf32> to vector<8x256xf32>
    %17 = arith.addf %14, %16 : vector<8x256xf32>
    %18 = vector.extract_strided_slice %17 {offsets = [0, 0], sizes = [8, 128], strides = [1, 1]} : vector<8x256xf32> to vector<8x128xf32>
    %19 = vector.extract_strided_slice %17 {offsets = [0, 128], sizes = [8, 128], strides = [1, 1]} : vector<8x256xf32> to vector<8x128xf32>
    %c0_16 = arith.constant 0 : index
    %c0_17 = arith.constant 0 : index
    %20 = vector.load %arg2[%c0_16, %c0_17] : memref<8x128xf32, #tpu.memory_space<vmem>>, vector<8x128xf32>
    %cst_18 = arith.constant 5.000000e-01 : f32
    %21 = vector.broadcast %cst_18 : f32 to vector<8x128xf32>
    %22 = arith.mulf %21, %19 : vector<8x128xf32>
    %23 = math.exp %22 : vector<8x128xf32>
    %24 = arith.mulf %20, %23 : vector<8x128xf32>
    %25 = arith.addf %18, %24 : vector<8x128xf32>
    %c0_19 = arith.constant 0 : index
    %c0_20 = arith.constant 0 : index
    %26 = vector.load %arg9[%c0_19, %c0_20] : memref<128x128xf32, #tpu.memory_space<vmem>>, vector<128x128xf32>
    %cst_21 = arith.constant dense<0.000000e+00> : vector<8x128xf32>
    %27 = tpu.matmul %25, %26, %cst_21 {dimension_numbers = #tpu.dot_dimension_numbers<[1], [0], [0], [1], [0, 0, 1, 1], [], []>} : vector<8x128xf32>, vector<128x128xf32>, vector<8x128xf32> -> vector<8x128xf32>
    %c0_22 = arith.constant 0 : index
    %c0_23 = arith.constant 0 : index
    %28 = vector.load %arg10[%c0_22, %c0_23] : memref<1x128xf32, #tpu.memory_space<vmem>>, vector<1x128xf32>
    %29 = vector.broadcast %28 : vector<1x128xf32> to vector<8x128xf32>
    %30 = arith.addf %27, %29 : vector<8x128xf32>
    %cst_24 = arith.constant 0.000000e+00 : f32
    %31 = vector.broadcast %cst_24 : f32 to vector<8x128xf32>
    %32 = arith.maximumf %30, %31 : vector<8x128xf32>
    %c0_25 = arith.constant 0 : index
    %c0_26 = arith.constant 0 : index
    %33 = vector.load %arg11[%c0_25, %c0_26] : memref<128x1024xf32, #tpu.memory_space<vmem>>, vector<128x1024xf32>
    %cst_27 = arith.constant dense<0.000000e+00> : vector<8x1024xf32>
    %34 = tpu.matmul %32, %33, %cst_27 {dimension_numbers = #tpu.dot_dimension_numbers<[1], [0], [0], [1], [0, 0, 1, 1], [], []>} : vector<8x128xf32>, vector<128x1024xf32>, vector<8x1024xf32> -> vector<8x1024xf32>
    %c0_28 = arith.constant 0 : index
    %c0_29 = arith.constant 0 : index
    %35 = vector.load %arg12[%c0_28, %c0_29] : memref<1x1024xf32, #tpu.memory_space<vmem>>, vector<1x1024xf32>
    %36 = vector.broadcast %35 : vector<1x1024xf32> to vector<8x1024xf32>
    %37 = arith.addf %34, %36 : vector<8x1024xf32>
    %c0_30 = arith.constant 0 : index
    %c0_31 = arith.constant 0 : index
    %38 = vector.load %arg13[%c0_30, %c0_31] : memref<8x1024xf32, #tpu.memory_space<vmem>>, vector<8x1024xf32>
    tpu.vector_store %arg13[%c0_30, %c0_31], %37 {strides = array<i32>} : memref<8x1024xf32, #tpu.memory_space<vmem>>, vector<8x1024xf32>,
    %c0_32 = arith.constant 0 : index
    %c0_33 = arith.constant 0 : index
    %39 = vector.load %arg14[%c0_32, %c0_33] : memref<8x128xf32, #tpu.memory_space<vmem>>, vector<8x128xf32>
    tpu.vector_store %arg14[%c0_32, %c0_33], %18 {strides = array<i32>} : memref<8x128xf32, #tpu.memory_space<vmem>>, vector<8x128xf32>,
    %c0_34 = arith.constant 0 : index
    %c0_35 = arith.constant 0 : index
    %40 = vector.load %arg15[%c0_34, %c0_35] : memref<8x128xf32, #tpu.memory_space<vmem>>, vector<8x128xf32>
    tpu.vector_store %arg15[%c0_34, %c0_35], %19 {strides = array<i32>} : memref<8x128xf32, #tpu.memory_space<vmem>>, vector<8x128xf32>,
    return
  }
  func.func @transform_0(%arg0: i32) -> (i32, i32) {
    %c0_i32 = arith.constant 0 : i32
    %c0_i32_0 = arith.constant 0 : i32
    return %arg0, %c0_i32 : i32, i32
  }
  func.func @transform_1(%arg0: i32) -> (i32, i32) {
    %c0_i32 = arith.constant 0 : i32
    %c0_i32_0 = arith.constant 0 : i32
    return %arg0, %c0_i32 : i32, i32
  }
  func.func @transform_2(%arg0: i32) -> (i32, i32) {
    %c0_i32 = arith.constant 0 : i32
    %c0_i32_0 = arith.constant 0 : i32
    %c0_i32_1 = arith.constant 0 : i32
    return %c0_i32, %c0_i32_0 : i32, i32
  }
  func.func @transform_3(%arg0: i32) -> (i32, i32) {
    %c0_i32 = arith.constant 0 : i32
    %c0_i32_0 = arith.constant 0 : i32
    %c0_i32_1 = arith.constant 0 : i32
    return %c0_i32, %c0_i32_0 : i32, i32
  }
  func.func @transform_4(%arg0: i32) -> (i32, i32) {
    %c0_i32 = arith.constant 0 : i32
    %c0_i32_0 = arith.constant 0 : i32
    %c0_i32_1 = arith.constant 0 : i32
    return %c0_i32, %c0_i32_0 : i32, i32
  }
  func.func @transform_5(%arg0: i32) -> (i32, i32) {
    %c0_i32 = arith.constant 0 : i32
    %c0_i32_0 = arith.constant 0 : i32
    %c0_i32_1 = arith.constant 0 : i32
    return %c0_i32, %c0_i32_0 : i32, i32
  }
  func.func @transform_6(%arg0: i32) -> (i32, i32) {
    %c0_i32 = arith.constant 0 : i32
    %c0_i32_0 = arith.constant 0 : i32
    %c0_i32_1 = arith.constant 0 : i32
    return %c0_i32, %c0_i32_0 : i32, i32
  }
  func.func @transform_7(%arg0: i32) -> (i32, i32) {
    %c0_i32 = arith.constant 0 : i32
    %c0_i32_0 = arith.constant 0 : i32
    %c0_i32_1 = arith.constant 0 : i32
    return %c0_i32, %c0_i32_0 : i32, i32
  }
  func.func @transform_8(%arg0: i32) -> (i32, i32) {
    %c0_i32 = arith.constant 0 : i32
    %c0_i32_0 = arith.constant 0 : i32
    %c0_i32_1 = arith.constant 0 : i32
    return %c0_i32, %c0_i32_0 : i32, i32
  }
  func.func @transform_9(%arg0: i32) -> (i32, i32) {
    %c0_i32 = arith.constant 0 : i32
    %c0_i32_0 = arith.constant 0 : i32
    %c0_i32_1 = arith.constant 0 : i32
    return %c0_i32, %c0_i32_0 : i32, i32
  }
  func.func @transform_10(%arg0: i32) -> (i32, i32) {
    %c0_i32 = arith.constant 0 : i32
    %c0_i32_0 = arith.constant 0 : i32
    %c0_i32_1 = arith.constant 0 : i32
    return %c0_i32, %c0_i32_0 : i32, i32
  }
  func.func @transform_11(%arg0: i32) -> (i32, i32) {
    %c0_i32 = arith.constant 0 : i32
    %c0_i32_0 = arith.constant 0 : i32
    %c0_i32_1 = arith.constant 0 : i32
    return %c0_i32, %c0_i32_0 : i32, i32
  }
  func.func @transform_12(%arg0: i32) -> (i32, i32) {
    %c0_i32 = arith.constant 0 : i32
    %c0_i32_0 = arith.constant 0 : i32
    return %arg0, %c0_i32 : i32, i32
  }
  func.func @transform_13(%arg0: i32) -> (i32, i32) {
    %c0_i32 = arith.constant 0 : i32
    %c0_i32_0 = arith.constant 0 : i32
    return %arg0, %c0_i32 : i32, i32
  }
  func.func @transform_14(%arg0: i32) -> (i32, i32) {
    %c0_i32 = arith.constant 0 : i32
    %c0_i32_0 = arith.constant 0 : i32
    return %arg0, %c0_i32 : i32, i32
  }
}

</mosaic_0001>

<bundles_post_ra>
// kernel: tpu_custom_call.1
= control target key start
LH: loop header
LB: loop body
LE: loop exit
PB: predicated region body
PF: predicated region fallthrough
CT: control target
= control target key end

     0   :  { %20 = vsyncpa [#allocation3], 0  ;;  %s2501_s0 = inlined_call_operand.hbm [shape: f32[8,1024], index: 0, kind: input, shape index: {}]   ;;  %s2502_s1 = inlined_call_operand.hbm [shape: f32[8,128], index: 1, kind: input, shape index: {}]   ;;  %s2503_s2 = inlined_call_operand.hbm [shape: f32[1024,128], index: 2, kind: input, shape index: {}]   ;;  %s2504_s3 = inlined_call_operand.vmem [shape: f32[1,128], index: 3, kind: input, shape index: {}]   ;;  %s2505_s4 = inlined_call_operand.hbm [shape: f32[128,128], index: 4, kind: input, shape index: {}]   ;;  %s2506_s5 = inlined_call_operand.vmem [shape: f32[1,128], index: 5, kind: input, shape index: {}]   ;;  %s2507_s6 = inlined_call_operand.hbm [shape: f32[128,256], index: 6, kind: input, shape index: {}]   ;;  %s2508_s7 = inlined_call_operand.vmem [shape: f32[1,256], index: 7, kind: input, shape index: {}]   ;;  %s2509_s8 = inlined_call_operand.hbm [shape: f32[128,128], index: 8, kind: input, shape index: {}]   ;;  %s2510_s9 = inlined_call_operand.vmem [shape: f32[1,128], index: 9, kind: input, shape index: {}]   ;;  %s2511_s10 = inlined_call_operand.hbm [shape: f32[128,1024], index: 10, kind: input, shape index: {}]   ;;  %s2512_s11 = inlined_call_operand.vmem [shape: f32[1,1024], index: 11, kind: input, shape index: {}]   ;;  %s2513_s12 = inlined_call_operand.hbm [shape: f32[8,1024], index: 12, kind: output, shape index: {0}]   ;;  %s2514_s13 = inlined_call_operand.hbm [shape: f32[8,128], index: 13, kind: output, shape index: {1}]   ;;  %s2515_s14 = inlined_call_operand.hbm [shape: f32[8,128], index: 14, kind: output, shape index: {2}]  }
   0x1   :  { %21 = vsyncpa [#allocation6], 0 }
   0x2   :  { %22 = vsyncpa [#allocation9], 0 }
   0x3   :  { %23 = vsyncpa [#allocation12], 0 }
   0x4   :  { %24 = vsyncpa [#allocation4], 0 }
   0x5   :  { %25 = vsyncpa [#allocation16], 0  ;;  %s2214_s29 = smov [#allocation5]   ;;  %s1982_s17 = scalar_lea.hbm %s2502_s1, 128 }
   0x6   :  { %s42_s30 = sshll.u32 %s2214_s29, 4  ;;  %p1983_p0 = scmp.ne.s32.totalorder %s2502_s1, %s1982_s17  ;;  %s43_s30 = int_to_ptr.vmem [resolvable:$true] %s42_s30 }
   0x7   :  { %p1986_p1 = scmp.lt.u32.totalorder %s1982_s17, %s2502_s1 }
   0x9   :  { %p1988_p2 = pnand %p1986_p1, %p1983_p0 }
   0xb   :  { %1991 = shalt.err (!%p1988_p2)
}
   0xc   :  { %s1992_s22 = scalar_lea.vmem %s43_s30, 128  ;;  %p1997_p4 = scmp.lt.s32.totalorder %s43_s30, %s43_s30 }
   0xd   :  { %p1993_p3 = scmp.ne.s32.totalorder %s43_s30, %s1992_s22  ;;  %p1998_p5 = scmp.lt.s32.totalorder %s1992_s22, %s1992_s22 }
   0xf   :  { %p1999_p6 = por %p1998_p5, %p1997_p4 }
  0x11   :  { %p2000_p7 = pnand %p1999_p6, %p1993_p3 }
  0x13   :  { %2003 = shalt.err (!%p2000_p7)
}
  0x14   :  { %45 = dma.hbm_to_vmem [thread:$0]  %s2502_s1, 128, %s43_s30, [#allocation6]  }
  0x15   :  { %s2215_s25 = smov [#allocation8]   ;;  %s2216_s27 = smov [#allocation11]  }
  0x16   :  { %s65_s26 = sshll.u32 %s2215_s25, 4  ;;  %s93_s28 = sshll.u32 %s2216_s27, 4  ;;  %s66_s26 = int_to_ptr.vmem [resolvable:$true] %s65_s26  ;;  %s94_s28 = int_to_ptr.vmem [resolvable:$true] %s93_s28 }
  0x17   :  { %s2004_s16 = scalar_lea.hbm %s2505_s4, 2048 }
  0x18   :  { %p2005_p8 = scmp.ne.s32.totalorder %s2505_s4, %s2004_s16  ;;  %p2008_p9 = scmp.lt.u32.totalorder %s2004_s16, %s2505_s4 }
  0x1a   :  { %p2010_p10 = pnand %p2008_p9, %p2005_p8 }
  0x1c   :  { %2013 = shalt.err (!%p2010_p10)
}
  0x1d   :  { %s2014_s1 = scalar_lea.vmem %s66_s26, 2048  ;;  %p2019_p12 = scmp.lt.s32.totalorder %s66_s26, %s66_s26 }
  0x1e   :  { %p2015_p11 = scmp.ne.s32.totalorder %s66_s26, %s2014_s1  ;;  %p2020_p13 = scmp.lt.s32.totalorder %s2014_s1, %s2014_s1 }
  0x20   :  { %p2021_p0 = por %p2020_p13, %p2019_p12 }
  0x22   :  { %p2022_p1 = pnand %p2021_p0, %p2015_p11 }
  0x24   :  { %2025 = shalt.err (!%p2022_p1)
}
  0x25   :  { %s2217_s30 = smov 128   ;;  %s2218_s21 = smov 8  }
  0x26   :  { %71 = dma.hbm_to_vmem [thread:$0]  %s2505_s4, 2048, %s66_s26, [#allocation9], %s2217_s30, %s2217_s30, %s2218_s21  }
  0x27   :  { %s2026_s27 = scalar_lea.hbm %s2509_s8, 2048 }
  0x28   :  { %p2027_p2 = scmp.ne.s32.totalorder %s2509_s8, %s2026_s27  ;;  %p2030_p3 = scmp.lt.u32.totalorder %s2026_s27, %s2509_s8 }
  0x2a   :  { %p2032_p4 = pnand %p2030_p3, %p2027_p2 }
  0x2c   :  { %2035 = shalt.err (!%p2032_p4)
}
  0x2d   :  { %s2036_s18 = scalar_lea.vmem %s94_s28, 2048  ;;  %p2041_p6 = scmp.lt.s32.totalorder %s94_s28, %s94_s28 }
  0x2e   :  { %p2037_p5 = scmp.ne.s32.totalorder %s94_s28, %s2036_s18  ;;  %p2042_p7 = scmp.lt.s32.totalorder %s2036_s18, %s2036_s18 }
  0x30   :  { %p2043_p8 = por %p2042_p7, %p2041_p6 }
  0x32   :  { %p2044_p9 = pnand %p2043_p8, %p2037_p5 }
  0x34   :  { %2047 = shalt.err (!%p2044_p9)
}
  0x35   :  { %99 = dma.hbm_to_vmem [thread:$0]  %s2509_s8, 2048, %s94_s28, [#allocation12], %s2217_s30, %s2217_s30, %s2218_s21  }
  0x36   :  { %s2219_s19 = smov [#allocation2]   ;;  %s2220_s1 = smov [#allocation7]  }
  0x37   :  { %s32_s20 = sshll.u32 %s2219_s19, 4  ;;  %s51_s22 = sshll.u32 %s2220_s1, 4  ;;  %s33_s20 = int_to_ptr.vmem [resolvable:$true] %s32_s20  ;;  %s52_s22 = int_to_ptr.vmem [resolvable:$true] %s51_s22 }
  0x38   :  { %s2048_s25 = scalar_lea.hbm %s2501_s0, 1024 }
  0x39   :  { %p2049_p10 = scmp.ne.s32.totalorder %s2501_s0, %s2048_s25  ;;  %p2052_p11 = scmp.lt.u32.totalorder %s2048_s25, %s2501_s0 }
  0x3b   :  { %p2054_p12 = pnand %p2052_p11, %p2049_p10 }
  0x3d   :  { %2057 = shalt.err (!%p2054_p12)
}
  0x3e   :  { %s2058_s8 = scalar_lea.vmem %s33_s20, 1024  ;;  %p2063_p0 = scmp.lt.s32.totalorder %s33_s20, %s33_s20 }
  0x3f   :  { %p2059_p13 = scmp.ne.s32.totalorder %s33_s20, %s2058_s8  ;;  %p2064_p1 = scmp.lt.s32.totalorder %s2058_s8, %s2058_s8 }
  0x41   :  { %p2065_p2 = por %p2064_p1, %p2063_p0 }
  0x43   :  { %p2066_p3 = pnand %p2065_p2, %p2059_p13 }
  0x45   :  { %2069 = shalt.err (!%p2066_p3)
}
  0x46   :  { %35 = dma.hbm_to_vmem [thread:$0]  %s2501_s0, 1024, %s33_s20, [#allocation3]  }
  0x47   :  { %s2070_s26 = scalar_lea.hbm %s2503_s2, 16384 }
  0x48   :  { %p2071_p4 = scmp.ne.s32.totalorder %s2503_s2, %s2070_s26  ;;  %p2074_p5 = scmp.lt.u32.totalorder %s2070_s26, %s2503_s2 }
  0x4a   :  { %p2076_p6 = pnand %p2074_p5, %p2071_p4 }
  0x4c   :  { %2079 = shalt.err (!%p2076_p6)
}
  0x4d   :  { %s2080_s25 = scalar_lea.vmem %s52_s22, 16384  ;;  %p2085_p8 = scmp.lt.s32.totalorder %s52_s22, %s52_s22 }
  0x4e   :  { %p2081_p7 = scmp.ne.s32.totalorder %s52_s22, %s2080_s25  ;;  %p2086_p9 = scmp.lt.s32.totalorder %s2080_s25, %s2080_s25 }
  0x50   :  { %p2087_p10 = por %p2086_p9, %p2085_p8 }
  0x52   :  { %p2088_p11 = pnand %p2087_p10, %p2081_p7 }
  0x54   :  { %2091 = shalt.err (!%p2088_p11)
}
  0x55   :  { %57 = dma.hbm_to_vmem [thread:$0]  %s2503_s2, 16384, %s52_s22, [#allocation6], %s2217_s30, %s2217_s30, %s2218_s21  }
  0x56   :  { %s2221_s27 = smov [#allocation10]   ;;  %s2092_s8 = scalar_lea.hbm %s2507_s6, 4096 }
  0x57   :  { %s79_s29 = sshll.u32 %s2221_s27, 4  ;;  %p2093_p12 = scmp.ne.s32.totalorder %s2507_s6, %s2092_s8  ;;  %s80_s29 = int_to_ptr.vmem [resolvable:$true] %s79_s29 }
  0x58   :  { %p2096_p13 = scmp.lt.u32.totalorder %s2092_s8, %s2507_s6 }
  0x5a   :  { %p2098_p0 = pnand %p2096_p13, %p2093_p12 }
  0x5c   :  { %2101 = shalt.err (!%p2098_p0)
}
  0x5d   :  { %s2102_s26 = scalar_lea.vmem %s80_s29, 4096  ;;  %p2107_p2 = scmp.lt.s32.totalorder %s80_s29, %s80_s29 }
  0x5e   :  { %p2103_p1 = scmp.ne.s32.totalorder %s80_s29, %s2102_s26  ;;  %p2108_p3 = scmp.lt.s32.totalorder %s2102_s26, %s2102_s26 }
  0x60   :  { %p2109_p4 = por %p2108_p3, %p2107_p2 }
  0x62   :  { %p2110_p5 = pnand %p2109_p4, %p2103_p1 }
  0x64   :  { %2113 = shalt.err (!%p2110_p5)
}
  0x65   :  { %s2222_s2 = smov 256   ;;  %s2223_s30 = smov 16  }
  0x66   :  { %85 = dma.hbm_to_vmem [thread:$0]  %s2507_s6, 4096, %s80_s29, [#allocation9], %s2222_s2, %s2222_s2, %s2223_s30  }
  0x67   :  { %s2224_s19 = smov [#allocation13]   ;;  %s2114_s25 = scalar_lea.hbm %s2511_s10, 16384 }
  0x68   :  { %s107_s1 = sshll.u32 %s2224_s19, 4  ;;  %p2115_p6 = scmp.ne.s32.totalorder %s2511_s10, %s2114_s25  ;;  %s108_s1 = int_to_ptr.vmem [resolvable:$true] %s107_s1 }
  0x69   :  { %p2118_p7 = scmp.lt.u32.totalorder %s2114_s25, %s2511_s10 }
  0x6b   :  { %p2120_p8 = pnand %p2118_p7, %p2115_p6 }
  0x6d   :  { %2123 = shalt.err (!%p2120_p8)
}
  0x6e   :  { %s2124_s16 = scalar_lea.vmem %s108_s1, 16384  ;;  %p2129_p10 = scmp.lt.s32.totalorder %s108_s1, %s108_s1 }
  0x6f   :  { %p2125_p9 = scmp.ne.s32.totalorder %s108_s1, %s2124_s16  ;;  %p2130_p11 = scmp.lt.s32.totalorder %s2124_s16, %s2124_s16 }
  0x71   :  { %p2131_p12 = por %p2130_p11, %p2129_p10 }
  0x73   :  { %p2132_p13 = pnand %p2131_p12, %p2125_p9 }
  0x75   :  { %2135 = shalt.err (!%p2132_p13)
}
  0x76   :  { %s2225_s6 = smov 1024   ;;  %s2226_s29 = smov 64  }
  0x77   :  { %113 = dma.hbm_to_vmem [thread:$0]  %s2511_s10, 16384, %s108_s1, [#allocation12], %s2225_s6, %s2225_s6, %s2226_s29  }
  0x78   :  { %2202 = dma.done.wait [#allocation3], 1024  }
  0x79   :  { %2203 = vsyncadd [#allocation3], 4294966272 }
  0x7a   :  { %2204 = dma.done.wait [#allocation6], 16512  }
  0x7b   :  { %2205 = vsyncadd [#allocation6], 4294950784 }
  0x7c   :  { %2206 = dma.done.wait [#allocation9], 6144  }
  0x7d   :  { %2207 = vsyncadd [#allocation9], 4294961152 }
  0x7e   :  { %2208 = dma.done.wait [#allocation12], 18432  }
  0x7f   :  { %2209 = vsyncadd [#allocation12], 4294948864  ;;  %v161_v0 = vld [vmem:[#allocation7 + $0x80] sm:$0xff]  ;;  %v162_v1 = vld [vmem:[#allocation7 + $0x88] sm:$0xff]  ;;  %vm2228_vm0 = vmmov 0  }
  0x80   :  { %v145_v2 = vld [vmem:[#allocation7] sm:$0xff]  ;;  %v1625_v3 = vpack.c.bf16 %v162_v1, %v161_v0  ;;  %v146_v4 = vld [vmem:[#allocation7 + $0x8] sm:$0xff]  ;;  %v163_v11 = vld [vmem:[#allocation7 + $0x90] sm:$0xff] }
  0x81   :  { %v193_v5 = vld [vmem:[#allocation7 + $0x180] sm:$0xff]  ;;  %v194_v6 = vld [vmem:[#allocation7 + $0x188] sm:$0xff]  ;;  %v1627_v7 = vpack.c.bf16 %v146_v4, %v145_v2  ;;  %v164_v13 = vld [vmem:[#allocation7 + $0x98] sm:$0xff] }
  0x82   :  { %v1657_v8 = vpack.c.bf16 %v194_v6, %v193_v5  ;;  %v177_v9 = vld [vmem:[#allocation7 + $0x100] sm:$0xff]  ;;  %v178_v10 = vld [vmem:[#allocation7 + $0x108] sm:$0xff]  ;;  %1626 = vmatprep.subr.bf16.mxu0 %v1625_v3  ;;  %v147_v14 = vld [vmem:[#allocation7 + $0x10] sm:$0xff]  ;;  %v1629_v16 = vpack.c.bf16 %v164_v13, %v163_v11 }
  0x83   :  { %v1659_v12 = vpack.c.bf16 %v178_v10, %v177_v9  ;;  %v148_v15 = vld [vmem:[#allocation7 + $0x18] sm:$0xff]  ;;  %1628 = vmatpush3.bf16.msra.mxu0 %v1627_v7  ;;  %v195_v18 = vld [vmem:[#allocation7 + $0x190] sm:$0xff]  ;;  %v165_v23 = vld [vmem:[#allocation7 + $0xa0] sm:$0xff] }
  0x84   :  { %1658 = vmatprep.subr.bf16.mxu1 %v1657_v8  ;;  %v1631_v17 = vpack.c.bf16 %v148_v15, %v147_v14  ;;  %v196_v19 = vld [vmem:[#allocation7 + $0x198] sm:$0xff]  ;;  %v179_v20 = vld [vmem:[#allocation7 + $0x110] sm:$0xff]  ;;  %v166_v24 = vld [vmem:[#allocation7 + $0xa8] sm:$0xff]  ;;  %1630 = vmatprep.subr.bf16.mxu0 %v1629_v16 }
  0x85   :  { %1660 = vmatpush3.bf16.msra.mxu1 %v1659_v12  ;;  %v1661_v21 = vpack.c.bf16 %v196_v19, %v195_v18  ;;  %v180_v22 = vld [vmem:[#allocation7 + $0x118] sm:$0xff]  ;;  %v1633_v26 = vpack.c.bf16 %v166_v24, %v165_v23  ;;  %v149_v27 = vld [vmem:[#allocation7 + $0x20] sm:$0xff]  ;;  %v150_v28 = vld [vmem:[#allocation7 + $0x28] sm:$0xff] }
  0x86   :  { %v1663_v25 = vpack.c.bf16 %v180_v22, %v179_v20  ;;  %v197_v29 = vld [vmem:[#allocation7 + $0x1a0] sm:$0xff]  ;;  %v198_v30 = vld [vmem:[#allocation7 + $0x1a8] sm:$0xff]  ;;  %v1635_v33 = vpack.c.bf16 %v150_v28, %v149_v27  ;;  %v167_v35 = vld [vmem:[#allocation7 + $0xb0] sm:$0xff] }
  0x87   :  { %1662 = vmatprep.subr.bf16.mxu1 %v1661_v21  ;;  %v181_v31 = vld [vmem:[#allocation7 + $0x120] sm:$0xff]  ;;  %v182_v32 = vld [vmem:[#allocation7 + $0x128] sm:$0xff]  ;;  %1632 = vmatpush3.bf16.msra.mxu0 %v1631_v17  ;;  %v1665_v34 = vpack.c.bf16 %v198_v30, %v197_v29  ;;  %v168_v36 = vld [vmem:[#allocation7 + $0xb8] sm:$0xff] }
  0x88   :  { %v151_v37 = vld [vmem:[#allocation7 + $0x30] sm:$0xff]  ;;  %1634 = vmatprep.subr.bf16.mxu0 %v1633_v26  ;;  %v1667_v38 = vpack.c.bf16 %v182_v32, %v181_v31  ;;  %v1637_v39 = vpack.c.bf16 %v168_v36, %v167_v35  ;;  %v152_v40 = vld [vmem:[#allocation7 + $0x38] sm:$0xff]  ;;  %v169_v46 = vld [vmem:[#allocation7 + $0xc0] sm:$0xff] }
  0x89   :  { %1664 = vmatpush3.bf16.msra.mxu1 %v1663_v25  ;;  %v199_v41 = vld [vmem:[#allocation7 + $0x1b0] sm:$0xff]  ;;  %v200_v42 = vld [vmem:[#allocation7 + $0x1b8] sm:$0xff]  ;;  %v170_v47 = vld [vmem:[#allocation7 + $0xc8] sm:$0xff]  ;;  %v1639_v48 = vpack.c.bf16 %v152_v40, %v151_v37 }
  0x8a   :  { %1666 = vmatprep.subr.bf16.mxu1 %v1665_v34  ;;  %v1669_v43 = vpack.c.bf16 %v200_v42, %v199_v41  ;;  %v183_v44 = vld [vmem:[#allocation7 + $0x130] sm:$0xff]  ;;  %v184_v45 = vld [vmem:[#allocation7 + $0x138] sm:$0xff]  ;;  %v201_v49 = vld [vmem:[#allocation7 + $0x1c0] sm:$0xff]  ;;  %v1641_v52 = vpack.c.bf16 %v170_v47, %v169_v46 }
  0x8b   :  { %1636 = vmatpush3.bf16.msra.mxu0 %v1635_v33  ;;  %v202_v50 = vld [vmem:[#allocation7 + $0x1c8] sm:$0xff]  ;;  %v1671_v51 = vpack.c.bf16 %v184_v45, %v183_v44  ;;  %v153_v53 = vld [vmem:[#allocation7 + $0x40] sm:$0xff]  ;;  %v171_v58 = vld [vmem:[#allocation7 + $0xd0] sm:$0xff] }
  0x8c   :  { %1638 = vmatprep.subr.bf16.mxu0 %v1637_v39  ;;  %v154_v54 = vld [vmem:[#allocation7 + $0x48] sm:$0xff]  ;;  %v185_v55 = vld [vmem:[#allocation7 + $0x140] sm:$0xff]  ;;  %v1673_v56 = vpack.c.bf16 %v202_v50, %v201_v49  ;;  %v172_v59 = vld [vmem:[#allocation7 + $0xd8] sm:$0xff] }
  0x8d   :  { %1668 = vmatpush3.bf16.msra.mxu1 %v1667_v38  ;;  %v186_v57 = vld [vmem:[#allocation7 + $0x148] sm:$0xff]  ;;  %v203_v60 = vld [vmem:[#allocation7 + $0x1d0] sm:$0xff]  ;;  %v204_v61 = vld [vmem:[#allocation7 + $0x1d8] sm:$0xff]  ;;  %v1643_v62 = vpack.c.bf16 %v154_v54, %v153_v53  ;;  %v1645_v0 = vpack.c.bf16 %v172_v59, %v171_v58 }
  0x8e   :  { %1670 = vmatprep.subr.bf16.mxu1 %v1669_v43  ;;  %v1675_v63 = vpack.c.bf16 %v186_v57, %v185_v55  ;;  %v155_v1 = vld [vmem:[#allocation7 + $0x50] sm:$0xff]  ;;  %v156_v2 = vld [vmem:[#allocation7 + $0x58] sm:$0xff]  ;;  %v1677_v4 = vpack.c.bf16 %v204_v61, %v203_v60  ;;  %v173_v6 = vld [vmem:[#allocation7 + $0xe0] sm:$0xff] }
  0x8f   :  { %1640 = vmatpush3.bf16.msra.mxu0 %v1639_v48  ;;  %v187_v3 = vld [vmem:[#allocation7 + $0x150] sm:$0xff]  ;;  %v188_v5 = vld [vmem:[#allocation7 + $0x158] sm:$0xff]  ;;  %v174_v7 = vld [vmem:[#allocation7 + $0xe8] sm:$0xff]  ;;  %v1647_v10 = vpack.c.bf16 %v156_v2, %v155_v1 }
  0x90   :  { %1642 = vmatprep.subr.bf16.mxu0 %v1641_v52  ;;  %v205_v8 = vld [vmem:[#allocation7 + $0x1e0] sm:$0xff]  ;;  %v206_v9 = vld [vmem:[#allocation7 + $0x1e8] sm:$0xff]  ;;  %v1679_v13 = vpack.c.bf16 %v188_v5, %v187_v3  ;;  %v1649_v14 = vpack.c.bf16 %v174_v7, %v173_v6  ;;  %v175_v19 = vld [vmem:[#allocation7 + $0xf0] sm:$0xff] }
  0x91   :  { %1672 = vmatpush3.bf16.msra.mxu1 %v1671_v51  ;;  %v157_v11 = vld [vmem:[#allocation7 + $0x60] sm:$0xff]  ;;  %v158_v12 = vld [vmem:[#allocation7 + $0x68] sm:$0xff]  ;;  %v1681_v18 = vpack.c.bf16 %v206_v9, %v205_v8  ;;  %v176_v20 = vld [vmem:[#allocation7 + $0xf8] sm:$0xff] }
  0x92   :  { %1674 = vmatprep.subr.bf16.mxu1 %v1673_v56  ;;  %v189_v15 = vld [vmem:[#allocation7 + $0x160] sm:$0xff]  ;;  %v190_v16 = vld [vmem:[#allocation7 + $0x168] sm:$0xff]  ;;  %v140_v21 = vld [vmem:[#allocation2 + $0x18] sm:$0xff]  ;;  %v1651_v24 = vpack.c.bf16 %v158_v12, %v157_v11  ;;  %v1653_v26 = vpack.c.bf16 %v176_v20, %v175_v19 }
  0x93   :  { %1644 = vmatpush3.bf16.msra.mxu0 %v1643_v62  ;;  %v138_v17 = vld [vmem:[#allocation2 + $0x8] sm:$0xff]  ;;  %v207_v22 = vld [vmem:[#allocation7 + $0x1f0] sm:$0xff]  ;;  %v208_v23 = vld [vmem:[#allocation7 + $0x1f8] sm:$0xff]  ;;  %414 = vmatprep.mubr.f32.mxu1 %v140_v21  ;;  %v1683_v25 = vpack.c.bf16 %v190_v16, %v189_v15 }
  0x94   :  { %1646 = vmatprep.subr.bf16.mxu0 %v1645_v0  ;;  %344 = vmatprep.mubr.f32.mxu0 %v138_v17  ;;  %v159_v27 = vld [vmem:[#allocation7 + $0x70] sm:$0xff]  ;;  %v160_v28 = vld [vmem:[#allocation7 + $0x78] sm:$0xff]  ;;  %v1685_v30 = vpack.c.bf16 %v208_v23, %v207_v22  ;;  %v225_v32 = vld [vmem:[#allocation7 + $0x280] sm:$0xff] }
  0x95   :  { %1676 = vmatpush3.bf16.msra.mxu1 %v1675_v63  ;;  %v191_v29 = vld [vmem:[#allocation7 + $0x170] sm:$0xff]  ;;  %v192_v31 = vld [vmem:[#allocation7 + $0x178] sm:$0xff]  ;;  %v226_v33 = vld [vmem:[#allocation7 + $0x288] sm:$0xff]  ;;  %v1655_v36 = vpack.c.bf16 %v160_v28, %v159_v27 }
  0x96   :  { %1678 = vmatprep.subr.bf16.mxu1 %v1677_v4  ;;  %v257_v34 = vld [vmem:[#allocation7 + $0x380] sm:$0xff]  ;;  %v258_v35 = vld [vmem:[#allocation7 + $0x388] sm:$0xff]  ;;  %v1687_v37 = vpack.c.bf16 %v192_v31, %v191_v29  ;;  %v1689_v38 = vpack.c.bf16 %v226_v33, %v225_v32  ;;  %v227_v44 = vld [vmem:[#allocation7 + $0x290] sm:$0xff] }
  0x97   :  { %1648 = vmatpush3.bf16.msra.mxu0 %v1647_v10  ;;  %v209_v39 = vld [vmem:[#allocation7 + $0x200] sm:$0xff]  ;;  %v210_v40 = vld [vmem:[#allocation7 + $0x208] sm:$0xff]  ;;  %v1721_v42 = vpack.c.bf16 %v258_v35, %v257_v34  ;;  %v228_v45 = vld [vmem:[#allocation7 + $0x298] sm:$0xff] }
  0x98   :  { %1650 = vmatprep.subr.bf16.mxu0 %v1649_v14  ;;  %v241_v41 = vld [vmem:[#allocation7 + $0x300] sm:$0xff]  ;;  %v242_v43 = vld [vmem:[#allocation7 + $0x308] sm:$0xff]  ;;  %v259_v46 = vld [vmem:[#allocation7 + $0x390] sm:$0xff]  ;;  %v1691_v49 = vpack.c.bf16 %v210_v40, %v209_v39  ;;  %v1693_v52 = vpack.c.bf16 %v228_v45, %v227_v44 }
  0x99   :  { %1680 = vmatpush3.bf16.msra.mxu1 %v1679_v13  ;;  %v260_v47 = vld [vmem:[#allocation7 + $0x398] sm:$0xff]  ;;  %v139_v50 = vld [vmem:[#allocation2 + $0x10] sm:$0xff]  ;;  %v1723_v51 = vpack.c.bf16 %v242_v43, %v241_v41  ;;  %v211_v53 = vld [vmem:[#allocation7 + $0x210] sm:$0xff] }
  0x9a   :  { %1682 = vmatprep.subr.bf16.mxu1 %v1681_v18  ;;  %v137_v48 = vld [vmem:[#allocation2] sm:$0xff]  ;;  %v243_v55 = vld [vmem:[#allocation7 + $0x310] sm:$0xff]  ;;  %v1725_v56 = vpack.c.bf16 %v260_v47, %v259_v46  ;;  %v229_v58 = vld [vmem:[#allocation7 + $0x2a0] sm:$0xff] }
  0x9b   :  { %1652 = vmatpush3.bf16.msra.mxu0 %v1651_v24  ;;  %v212_v54 = vld [vmem:[#allocation7 + $0x218] sm:$0xff]  ;;  %v230_v59 = vld [vmem:[#allocation7 + $0x2a8] sm:$0xff]  ;;  %v261_v60 = vld [vmem:[#allocation7 + $0x3a0] sm:$0xff] }
  0x9c   :  { %1654 = vmatprep.subr.bf16.mxu0 %v1653_v26  ;;  %v244_v57 = vld [vmem:[#allocation7 + $0x318] sm:$0xff]  ;;  %v262_v61 = vld [vmem:[#allocation7 + $0x3a8] sm:$0xff]  ;;  %v1695_v62 = vpack.c.bf16 %v212_v54, %v211_v53  ;;  %v1697_v0 = vpack.c.bf16 %v230_v59, %v229_v58  ;;  %v213_v1 = vld [vmem:[#allocation7 + $0x220] sm:$0xff] }
  0x9d   :  { %1684 = vmatpush3.bf16.msra.mxu1 %v1683_v25  ;;  %v1727_v63 = vpack.c.bf16 %v244_v57, %v243_v55  ;;  %v214_v2 = vld [vmem:[#allocation7 + $0x228] sm:$0xff]  ;;  %v245_v3 = vld [vmem:[#allocation7 + $0x320] sm:$0xff]  ;;  %v1729_v4 = vpack.c.bf16 %v262_v61, %v261_v60  ;;  %v231_v6 = vld [vmem:[#allocation7 + $0x2b0] sm:$0xff] }
  0x9e   :  { %1686 = vmatprep.subr.bf16.mxu1 %v1685_v30  ;;  %v246_v5 = vld [vmem:[#allocation7 + $0x328] sm:$0xff]  ;;  %v232_v7 = vld [vmem:[#allocation7 + $0x2b8] sm:$0xff]  ;;  %v263_v8 = vld [vmem:[#allocation7 + $0x3b0] sm:$0xff]  ;;  %v1699_v10 = vpack.c.bf16 %v214_v2, %v213_v1 }
  0x9f   :  { %1656 = vmatpush3.bf16.msra.mxu0 %v1655_v36  ;;  %v264_v9 = vld [vmem:[#allocation7 + $0x3b8] sm:$0xff]  ;;  %v1731_v11 = vpack.c.bf16 %v246_v5, %v245_v3  ;;  %v1701_v12 = vpack.c.bf16 %v232_v7, %v231_v6  ;;  %v215_v13 = vld [vmem:[#allocation7 + $0x230] sm:$0xff]  ;;  %v233_v18 = vld [vmem:[#allocation7 + $0x2c0] sm:$0xff] }
  0xa0   :  { %1690 = vmatprep.subr.bf16.mxu0 %v1689_v38  ;;  %v216_v14 = vld [vmem:[#allocation7 + $0x238] sm:$0xff]  ;;  %v247_v15 = vld [vmem:[#allocation7 + $0x330] sm:$0xff]  ;;  %v1733_v16 = vpack.c.bf16 %v264_v9, %v263_v8  ;;  %v234_v19 = vld [vmem:[#allocation7 + $0x2c8] sm:$0xff] }
  0xa1   :  { %1688 = vmatpush3.bf16.msra.mxu1 %v1687_v37  ;;  %v248_v17 = vld [vmem:[#allocation7 + $0x338] sm:$0xff]  ;;  %v265_v20 = vld [vmem:[#allocation7 + $0x3c0] sm:$0xff]  ;;  %v266_v21 = vld [vmem:[#allocation7 + $0x3c8] sm:$0xff]  ;;  %v1703_v22 = vpack.c.bf16 %v216_v14, %v215_v13  ;;  %v1705_v26 = vpack.c.bf16 %v234_v19, %v233_v18 }
  0xa2   :  { %1722 = vmatprep.subr.bf16.mxu1 %v1721_v42  ;;  %345 = vmatmul.mubr.f32.vlgmr.msra.gmra.mrb[0].mxu0 %v137_v48  ;;  %v142_v23 = vld [vmem:[#allocation2 + $0x28] sm:$0xff]  ;;  %v144_v24 = vld [vmem:[#allocation2 + $0x38] sm:$0xff]  ;;  %v1735_v25 = vpack.c.bf16 %v248_v17, %v247_v15  ;;  %v218_v28 = vld [vmem:[#allocation7 + $0x248] sm:$0xff]  ;;  %v1737_v30 = vpack.c.bf16 %v266_v21, %v265_v20 }
  0xa3   :  { %1692 = vmatpush3.bf16.msra.mxu0 %v1691_v49  ;;  %v217_v27 = vld [vmem:[#allocation7 + $0x240] sm:$0xff]  ;;  %v250_v31 = vld [vmem:[#allocation7 + $0x348] sm:$0xff]  ;;  %v235_v32 = vld [vmem:[#allocation7 + $0x2d0] sm:$0xff]  ;;  %484 = vmatprep.mubr.f32.mxu0 %v142_v23 }
  0xa4   :  { %415 = vmatmul.mubr.f32.vlgmr.msra.gmra.mrb[0].mxu1 %v139_v50  ;;  %1694 = vmatprep.subr.bf16.mxu0 %v1693_v52  ;;  %v249_v29 = vld [vmem:[#allocation7 + $0x340] sm:$0xff]  ;;  %v236_v33 = vld [vmem:[#allocation7 + $0x2d8] sm:$0xff]  ;;  %v267_v34 = vld [vmem:[#allocation7 + $0x3d0] sm:$0xff]  ;;  %v1707_v36 = vpack.c.bf16 %v218_v28, %v217_v27 }
  0xa5   :  { %1724 = vmatpush3.bf16.msra.mxu1 %v1723_v51  ;;  %v268_v35 = vld [vmem:[#allocation7 + $0x3d8] sm:$0xff]  ;;  %554 = vmatprep.mubr.f32.mxu1 %v144_v24  ;;  %v1739_v37 = vpack.c.bf16 %v250_v31, %v249_v29  ;;  %v1709_v38 = vpack.c.bf16 %v236_v33, %v235_v32  ;;  %v219_v39 = vld [vmem:[#allocation7 + $0x250] sm:$0xff]  ;;  %v237_v44 = vld [vmem:[#allocation7 + $0x2e0] sm:$0xff]  ;;  %v2229_v33 = vmov 0.0  }
  0xa6   :  { %1726 = vmatprep.subr.bf16.mxu1 %v1725_v56  ;;  %v220_v40 = vld [vmem:[#allocation7 + $0x258] sm:$0xff]  ;;  %v251_v41 = vld [vmem:[#allocation7 + $0x350] sm:$0xff]  ;;  %v1741_v42 = vpack.c.bf16 %v268_v35, %v267_v34  ;;  %v238_v45 = vld [vmem:[#allocation7 + $0x2e8] sm:$0xff] }
  0xa7   :  { %1696 = vmatpush3.bf16.msra.mxu0 %v1695_v62  ;;  %v252_v43 = vld [vmem:[#allocation7 + $0x358] sm:$0xff]  ;;  %v269_v46 = vld [vmem:[#allocation7 + $0x3e0] sm:$0xff]  ;;  %v270_v47 = vld [vmem:[#allocation7 + $0x3e8] sm:$0xff]  ;;  %v1711_v48 = vpack.c.bf16 %v220_v40, %v219_v39  ;;  %v1713_v50 = vpack.c.bf16 %v238_v45, %v237_v44 }
  0xa8   :  { %1698 = vmatprep.subr.bf16.mxu0 %v1697_v0  ;;  %v1743_v49 = vpack.c.bf16 %v252_v43, %v251_v41  ;;  %v221_v51 = vld [vmem:[#allocation7 + $0x260] sm:$0xff]  ;;  %v222_v52 = vld [vmem:[#allocation7 + $0x268] sm:$0xff]  ;;  %v1745_v54 = vpack.c.bf16 %v270_v47, %v269_v46  ;;  %v239_v56 = vld [vmem:[#allocation7 + $0x2f0] sm:$0xff] }
  0xa9   :  { %1728 = vmatpush3.bf16.msra.mxu1 %v1727_v63  ;;  %v253_v53 = vld [vmem:[#allocation7 + $0x360] sm:$0xff]  ;;  %v254_v55 = vld [vmem:[#allocation7 + $0x368] sm:$0xff]  ;;  %v240_v57 = vld [vmem:[#allocation7 + $0x2f8] sm:$0xff]  ;;  %v1715_v60 = vpack.c.bf16 %v222_v52, %v221_v51 }
  0xaa   :  { %1730 = vmatprep.subr.bf16.mxu1 %v1729_v4  ;;  %v271_v58 = vld [vmem:[#allocation7 + $0x3f0] sm:$0xff]  ;;  %v272_v59 = vld [vmem:[#allocation7 + $0x3f8] sm:$0xff]  ;;  %v1747_v61 = vpack.c.bf16 %v254_v55, %v253_v53  ;;  %v1717_v62 = vpack.c.bf16 %v240_v57, %v239_v56  ;;  %v143_v7 = vld [vmem:[#allocation2 + $0x30] sm:$0xff] }
  0xab   :  { %1700 = vmatpush3.bf16.msra.mxu0 %v1699_v10  ;;  %v223_v63 = vld [vmem:[#allocation7 + $0x270] sm:$0xff]  ;;  %v224_v0 = vld [vmem:[#allocation7 + $0x278] sm:$0xff]  ;;  %v1749_v1 = vpack.c.bf16 %v272_v59, %v271_v58  ;;  %v561_v8 = vld [vmem:[#allocation8] sm:$0xff] }
  0xac   :  { %1702 = vmatprep.subr.bf16.mxu0 %v1701_v12  ;;  %v255_v2 = vld [vmem:[#allocation7 + $0x370] sm:$0xff]  ;;  %v256_v3 = vld [vmem:[#allocation7 + $0x378] sm:$0xff]  ;;  %v1719_v4 = vpack.c.bf16 %v224_v0, %v223_v63  ;;  %v562_v9 = vld [vmem:[#allocation8 + $0x8] sm:$0xff] }
  0xad   :  { %1732 = vmatpush3.bf16.msra.mxu1 %v1731_v11  ;;  %v1751_v5 = vpack.c.bf16 %v256_v3, %v255_v2  ;;  %v141_v6 = vld [vmem:[#allocation2 + $0x20] sm:$0xff]  ;;  %v563_v10 = vld [vmem:[#allocation8 + $0x10] sm:$0xff]  ;;  %v2227_v11 = vmov 0.0|0.0   ;;  %v1754_v12 = vpack.c.bf16 %v562_v9, %v561_v8  ;;  %v565_v15 = vld [vmem:[#allocation8 + $0x20] sm:$0xff] }
  0xae   :  { %1734 = vmatprep.subr.bf16.mxu1 %v1733_v16  ;;  %v564_v13 = vld [vmem:[#allocation8 + $0x18] sm:$0xff]  ;;  %v566_v16 = vld [vmem:[#allocation8 + $0x28] sm:$0xff]  ;;  %v567_v18 = vld [vmem:[#allocation8 + $0x30] sm:$0xff] }
  0xaf   :  { %1704 = vmatpush3.bf16.msra.mxu0 %v1703_v22  ;;  %v1757_v14 = vpack.c.bf16 %v564_v13, %v563_v10  ;;  %v1760_v17 = vpack.c.bf16 %v566_v16, %v565_v15  ;;  %v568_v19 = vld [vmem:[#allocation8 + $0x38] sm:$0xff]  ;;  %v569_v21 = vld [vmem:[#allocation8 + $0x40] sm:$0xff]  ;;  %v570_v22 = vld [vmem:[#allocation8 + $0x48] sm:$0xff] }
  0xb0   :  { %1706 = vmatprep.subr.bf16.mxu0 %v1705_v26  ;;  %v1763_v20 = vpack.c.bf16 %v568_v19, %v567_v18  ;;  %v1766_v23 = vpack.c.bf16 %v570_v22, %v569_v21  ;;  %v571_v24 = vld [vmem:[#allocation8 + $0x50] sm:$0xff]  ;;  %v573_v27 = vld [vmem:[#allocation8 + $0x60] sm:$0xff]  ;;  %v574_v28 = vld [vmem:[#allocation8 + $0x68] sm:$0xff] }
  0xb1   :  { %1736 = vmatpush3.bf16.msra.mxu1 %v1735_v25  ;;  %v572_v25 = vld [vmem:[#allocation8 + $0x58] sm:$0xff]  ;;  %v1772_v29 = vpack.c.bf16 %v574_v28, %v573_v27  ;;  %v655_v34 = vld [vmem:[#allocation10 + $0x8] sm:$0xff]  ;;  %v658_v43 = vld [vmem:[#allocation10 + $0x20] sm:$0xff] }
  0xb2   :  { %1738 = vmatprep.subr.bf16.mxu1 %v1737_v30  ;;  %v1769_v26 = vpack.c.bf16 %v572_v25, %v571_v24  ;;  %v575_v30 = vld [vmem:[#allocation8 + $0x70] sm:$0xff]  ;;  %v576_v31 = vld [vmem:[#allocation8 + $0x78] sm:$0xff]  ;;  %v659_v39 = vld [vmem:[#allocation10 + $0x28] sm:$0xff] }
  0xb3   :  { %1708 = vmatpush3.bf16.msra.mxu0 %v1707_v36  ;;  %v1775_v32 = vpack.c.bf16 %v576_v31, %v575_v30  ;;  %v657_v35 = vld [vmem:[#allocation10 + $0x18] sm:$0xff]  ;;  %v654_v36 = vld [vmem:[#allocation10] sm:$0xff]  ;;  %v660_v44 = vld [vmem:[#allocation10 + $0x30] sm:$0xff] }
  0xb4   :  { %1710 = vmatprep.subr.bf16.mxu0 %v1709_v38  ;;  %v656_v38 = vld [vmem:[#allocation10 + $0x10] sm:$0xff]  ;;  %v661_v40 = vld [vmem:[#allocation10 + $0x38] sm:$0xff]  ;;  %v663_v45 = vld [vmem:[#allocation10 + $0x48] sm:$0xff]  ;;  %v1783_v47 = vpack.c.bf16 %v660_v44, %v658_v43 }
  0xb5   :  { %1740 = vmatpush3.bf16.msra.mxu1 %v1739_v37  ;;  %v1777_v37 = vpack.c.bf16 %v657_v35, %v655_v34  ;;  %v1779_v41 = vpack.c.bf16 %v656_v38, %v654_v36  ;;  %v665_v46 = vld [vmem:[#allocation10 + $0x58] sm:$0xff]  ;;  %v667_v51 = vld [vmem:[#allocation10 + $0x68] sm:$0xff]  ;;  %v666_v55 = vld [vmem:[#allocation10 + $0x60] sm:$0xff] }
  0xb6   :  { %1742 = vmatprep.subr.bf16.mxu1 %v1741_v42  ;;  %v1781_v42 = vpack.c.bf16 %v661_v40, %v659_v39  ;;  %v669_v52 = vld [vmem:[#allocation10 + $0x78] sm:$0xff]  ;;  %v668_v56 = vld [vmem:[#allocation10 + $0x70] sm:$0xff]  ;;  %v671_v57 = vld [vmem:[#allocation10 + $0x88] sm:$0xff] }
  0xb7   :  { %1712 = vmatpush3.bf16.msra.mxu0 %v1711_v48  ;;  %v1785_v48 = vpack.c.bf16 %v665_v46, %v663_v45  ;;  %v673_v58 = vld [vmem:[#allocation10 + $0x98] sm:$0xff]  ;;  %v1791_v59 = vpack.c.bf16 %v668_v56, %v666_v55  ;;  %v675_v63 = vld [vmem:[#allocation10 + $0xa8] sm:$0xff]  ;;  %v674_v3 = vld [vmem:[#allocation10 + $0xa0] sm:$0xff] }
  0xb8   :  { %1714 = vmatprep.subr.bf16.mxu0 %v1713_v50  ;;  %v664_v50 = vld [vmem:[#allocation10 + $0x50] sm:$0xff]  ;;  %v677_v0 = vld [vmem:[#allocation10 + $0xb8] sm:$0xff]  ;;  %v678_v9 = vld [vmem:[#allocation10 + $0xc0] sm:$0xff] }
  0xb9   :  { %1744 = vmatpush3.bf16.msra.mxu1 %v1743_v49  ;;  %v662_v49 = vld [vmem:[#allocation10 + $0x40] sm:$0xff]  ;;  %v1797_v2 = vpack.c.bf16 %v677_v0, %v675_v63  ;;  %v680_v10 = vld [vmem:[#allocation10 + $0xd0] sm:$0xff]  ;;  %v685_v13 = vld [vmem:[#allocation10 + $0xf8] sm:$0xff] }
  0xba   :  { %1746 = vmatprep.subr.bf16.mxu1 %v1745_v54  ;;  %v1787_v53 = vpack.c.bf16 %v664_v50, %v662_v49  ;;  %v1789_v54 = vpack.c.bf16 %v669_v52, %v667_v51  ;;  %v682_v35 = vld [vmem:[#allocation10 + $0xe0] sm:$0xff]  ;;  %v684_v36 = vld [vmem:[#allocation10 + $0xf0] sm:$0xff]  ;;  %v776_v39 = vld [vmem:[#allocation11 + $0x8] sm:$0xff] }
  0xbb   :  { %1716 = vmatpush3.bf16.msra.mxu0 %v1715_v60  ;;  %v1793_v60 = vpack.c.bf16 %v673_v58, %v671_v57  ;;  %v775_v38 = vld [vmem:[#allocation11] sm:$0xff]  ;;  %v777_v40 = vld [vmem:[#allocation11 + $0x10] sm:$0xff]  ;;  %v1379_v44 = vld [vmem:[%s2506_s5] ss:$0 sm:$0xff] }
  0xbc   :  { %1718 = vmatprep.subr.bf16.mxu0 %v1717_v62  ;;  %v672_v62 = vld [vmem:[#allocation10 + $0x90] sm:$0xff]  ;;  %v780_v49 = vld [vmem:[#allocation11 + $0x28] sm:$0xff]  ;;  %v782_v52 = vld [vmem:[#allocation11 + $0x38] sm:$0xff] }
  0xbd   :  { %1748 = vmatpush3.bf16.msra.mxu1 %v1747_v61  ;;  %v670_v61 = vld [vmem:[#allocation10 + $0x80] sm:$0xff]  ;;  %v781_v51 = vld [vmem:[#allocation11 + $0x30] sm:$0xff]  ;;  %v784_v55 = vld [vmem:[#allocation11 + $0x48] sm:$0xff] }
  0xbe   :  { %1750 = vmatprep.subr.bf16.mxu1 %v1749_v1  ;;  %v1795_v1 = vpack.c.bf16 %v672_v62, %v670_v61  ;;  %v785_v57 = vld [vmem:[#allocation11 + $0x50] sm:$0xff]  ;;  %v786_v58 = vld [vmem:[#allocation11 + $0x58] sm:$0xff]  ;;  %v788_v61 = vld [vmem:[#allocation11 + $0x68] sm:$0xff] }
  0xbf   :  { %1720 = vmatpush3.bf16.msra.mxu0 %v1719_v4  ;;  %v676_v4 = vld [vmem:[#allocation10 + $0xb0] sm:$0xff]  ;;  %v790_v0 = vld [vmem:[#allocation11 + $0x78] sm:$0xff] }
  0xc0   :  { %1753 = vmatprep.subr.bf16.mxu0 %v2227_v11  ;;  %v789_v63 = vld [vmem:[#allocation11 + $0x70] sm:$0xff] }
  0xc1   :  { %1752 = vmatpush3.bf16.msra.mxu1 %v1751_v5  ;;  %v679_v5 = vld [vmem:[#allocation10 + $0xc8] sm:$0xff] }
  0xc2   :  { %485 = vmatmul.mubr.f32.vlgmr.msra.gmra.mrb[2].mxu0 %v141_v6  ;;  %1778 = vmatprep.subr.bf16.mxu1 %v1777_v37  ;;  %v681_v6 = vld [vmem:[#allocation10 + $0xd8] sm:$0xff]  ;;  %v1807_v37 = vpack.c.bf16 %v684_v36, %v682_v35  ;;  %v950_v36 = vld [vmem:[#allocation13 + $0x288] sm:$0xff] }
  0xc3   :  { %1755 = vmatpush3.bf16.msra.mxu0 %v1754_v12  ;;  %1587 = vmatprep.mubr.msk.f32.mxu0 %vm2228_vm0, %v2229_v33  ;;  %v1801_v8 = vpack.c.bf16 %v681_v6, %v679_v5  ;;  %v683_v12 = vld [vmem:[#allocation10 + $0xe8] sm:$0xff]  ;;  %v880_v6 = vld [vmem:[#allocation13 + $0x58] sm:$0xff] }
  0xc4   :  { %555 = vmatmul.mubr.f32.vlgmr.msra.gmra.mrb[2].mxu1 %v143_v7  ;;  %1756 = vmatprep.subr.bf16.mxu0 %v2227_v11  ;;  %v1799_v7 = vpack.c.bf16 %v676_v4, %v674_v3  ;;  %v1805_v15 = vpack.c.bf16 %v685_v13, %v683_v12  ;;  %v878_v3 = vld [vmem:[#allocation13 + $0x48] sm:$0xff]  ;;  %v872_v4 = vld [vmem:[#allocation13 + $0x18] sm:$0xff] }
  0xc5   :  { %762 = vmatprep.mubr.f32.mxu1 %v2229_v33  ;;  %1780 = vmatpush1.bf16.msra.mxu1 %v1779_v41  ;;  %v1810_v41 = vpack.c.bf16 %v776_v39, %v775_v38  ;;  %v886_v12 = vld [vmem:[#allocation13 + $0x88] sm:$0xff]  ;;  %v949_v39 = vld [vmem:[#allocation13 + $0x280] sm:$0xff] }
  0xc6   :  { %1782 = vmatprep.subr.bf16.mxu1 %v1781_v42  ;;  %v778_v42 = vld [vmem:[#allocation11 + $0x18] sm:$0xff]  ;;  %v894_v13 = vld [vmem:[#allocation13 + $0xc8] sm:$0xff] }
  0xc7   :  { %1758 = vmatpush3.bf16.msra.mxu0 %v1757_v14  ;;  %v1803_v14 = vpack.c.bf16 %v680_v10, %v678_v9  ;;  %v1813_v43 = vpack.c.bf16 %v778_v42, %v777_v40  ;;  %v1865_v9 = vpack.c.bf16 %v880_v6, %v872_v4  ;;  %v957_v40 = vld [vmem:[#allocation13 + $0x2c0] sm:$0xff]  ;;  %v966_v42 = vld [vmem:[#allocation13 + $0x308] sm:$0xff] }
  0xc8   :  { %1759 = vmatprep.subr.bf16.mxu0 %v2227_v11 }
  0xc9   :  { %1784 = vmatpush1.bf16.msra.mxu1 %v1783_v47 }
  0xca   :  { %1786 = vmatprep.subr.bf16.mxu1 %v1785_v48  ;;  %v779_v48 = vld [vmem:[#allocation11 + $0x20] sm:$0xff] }
  0xcb   :  { %1761 = vmatpush3.bf16.msra.mxu0 %v1760_v17  ;;  %v1378_v17 = vld [vmem:[%s2504_s3] ss:$0 sm:$0xff]  ;;  %v1816_v50 = vpack.c.bf16 %v780_v49, %v779_v48  ;;  %v688_v48 = vlaneseq }
  0xcc   :  { %1762 = vmatprep.subr.bf16.mxu0 %v2227_v11 }
  0xcd   :  { %1788 = vmatpush1.bf16.msra.mxu1 %v1787_v53  ;;  %v1819_v53 = vpack.c.bf16 %v782_v52, %v781_v51  ;;  %v2429_v49 = vshrl.u32 %v688_v48, 7  ;;  %v686_v51 = vld [vmem:[%s2508_s7] sm:$0x3] }
  0xce   :  { %1790 = vmatprep.subr.bf16.mxu1 %v1789_v54  ;;  %v783_v54 = vld [vmem:[#allocation11 + $0x40] sm:$0xff] }
  0xcf   :  { %1764 = vmatpush3.bf16.msra.mxu0 %v1763_v20  ;;  %v1822_v56 = vpack.c.bf16 %v784_v55, %v783_v54  ;;  %v694_v52 = vsub.s32 1, %v2429_v49 }
  0xd0   :  { %1765 = vmatprep.subr.bf16.mxu0 %v2227_v11 }
  0xd1   :  { %1792 = vmatpush1.bf16.msra.mxu1 %v1791_v59  ;;  %v1825_v59 = vpack.c.bf16 %v786_v58, %v785_v57  ;;  %v695_v54 = vrot.slane %v686_v51, %v694_v52 }
  0xd2   :  { %1794 = vmatprep.subr.bf16.mxu1 %v1793_v60  ;;  %v787_v60 = vld [vmem:[#allocation11 + $0x60] sm:$0xff] }
  0xd3   :  { %1767 = vmatpush3.bf16.msra.mxu0 %v1766_v23  ;;  %v1828_v62 = vpack.c.bf16 %v788_v61, %v787_v60  ;;  %v769_v61 = vld [vmem:[#allocation5] sm:$0xff] }
  0xd4   :  { %1768 = vmatprep.subr.bf16.mxu0 %v2227_v11 }
  0xd5   :  { %1796 = vmatpush1.bf16.msra.mxu1 %v1795_v1  ;;  %v1831_v1 = vpack.c.bf16 %v790_v0, %v789_v63  ;;  %v879_v63 = vld [vmem:[#allocation13 + $0x50] sm:$0xff] }
  0xd6   :  { %1798 = vmatprep.subr.bf16.mxu1 %v1797_v2  ;;  %v870_v2 = vld [vmem:[#allocation13 + $0x8] sm:$0xff] }
  0xd7   :  { %1770 = vmatpush3.bf16.msra.mxu0 %v1769_v26  ;;  %v1833_v5 = vpack.c.bf16 %v878_v3, %v870_v2  ;;  %v896_v2 = vld [vmem:[#allocation13 + $0xd8] sm:$0xff] }
  0xd8   :  { %1771 = vmatprep.subr.bf16.mxu0 %v2227_v11 }
  0xd9   :  { %1800 = vmatpush1.bf16.msra.mxu1 %v1799_v7  ;;  %v869_v7 = vld [vmem:[#allocation13] sm:$0xff] }
  0xda   :  { %1802 = vmatprep.subr.bf16.mxu1 %v1801_v8  ;;  %v877_v8 = vld [vmem:[#allocation13 + $0x40] sm:$0xff] }
  0xdb   :  { %1773 = vmatpush3.bf16.msra.mxu0 %v1772_v29  ;;  %v1835_v10 = vpack.c.bf16 %v877_v8, %v869_v7  ;;  %v887_v7 = vld [vmem:[#allocation13 + $0x90] sm:$0xff] }
  0xdc   :  { %1774 = vmatprep.subr.bf16.mxu0 %v2227_v11  ;;  %v895_v8 = vld [vmem:[#allocation13 + $0xd0] sm:$0xff] }
  0xdd   :  { %1804 = vmatpush1.bf16.msra.mxu1 %v1803_v14  ;;  %v1837_v14 = vpack.c.bf16 %v894_v13, %v886_v12  ;;  %v1871_v12 = vpack.c.bf16 %v895_v8, %v887_v7  ;;  %v900_v7 = vld [vmem:[#allocation13 + $0xf8] sm:$0xff] }
  0xde   :  { %1806 = vmatprep.subr.bf16.mxu1 %v1805_v15  ;;  %v885_v15 = vld [vmem:[#allocation13 + $0x80] sm:$0xff] }
  0xdf   :  { %1776 = vmatpush3.bf16.msra.mxu0 %v1775_v32 }
  0xe0   :  { %1809 = vmatprep.subr.bf16.mxu0 %v2227_v11 }
  0xe1   :  { %1808 = vmatpush1.bf16.msra.mxu1 %v1807_v37  ;;  %v958_v37 = vld [vmem:[#allocation13 + $0x2c8] sm:$0xff] }
  0xe2   :  { %1834 = vmatprep.subr.bf16.mxu1 %v1833_v5  ;;  %v1853_v38 = vpack.c.bf16 %v958_v37, %v950_v36 }
 0x175   :  { %v1413_v16 = vpop.f32.mrb[0].mxu0 }
 0x176   :  { %v1414_v18 = vpop.f32.mrb[1].mxu0 }
 0x177   :  { %v1448_v19 = vpop.f32.mrb[0].mxu1  ;;  %v1415_v20 = vadd.f32 %v1414_v18, %v1413_v16  ;;  %v893_v16 = vld [vmem:[#allocation13 + $0xc0] sm:$0xff]  ;;  %v910_v18 = vld [vmem:[#allocation13 + $0x148] sm:$0xff] }
 0x178   :  { %v1449_v21 = vpop.f32.mrb[1].mxu1 }
 0x179   :  { %v1450_v22 = vadd.f32 %v1449_v21, %v1448_v19  ;;  %v347_v23 = vadd.f32 %v1415_v20, %v1378_v17  ;;  %v1839_v17 = vpack.c.bf16 %v893_v16, %v885_v15  ;;  %v901_v20 = vld [vmem:[#allocation13 + $0x100] sm:$0xff]  ;;  %v911_v15 = vld [vmem:[#allocation13 + $0x150] sm:$0xff]  ;;  %v920_v16 = vld [vmem:[#allocation13 + $0x198] sm:$0xff] }
 0x17a   :  { %v909_v21 = vld [vmem:[#allocation13 + $0x140] sm:$0xff] }
 0x17b   :  { %v417_v24 = vadd.f32 %v1450_v22, %v347_v23  ;;  %v1843_v22 = vpack.c.bf16 %v909_v21, %v901_v20  ;;  %v918_v23 = vld [vmem:[#allocation13 + $0x188] sm:$0xff]  ;;  %v927_v20 = vld [vmem:[#allocation13 + $0x1d0] sm:$0xff]  ;;  %v936_v21 = vld [vmem:[#allocation13 + $0x218] sm:$0xff] }
 0x195   :  { %v1483_v25 = vpop.f32.mrb[2].mxu0 }
 0x196   :  { %v1484_v26 = vpop.f32.mrb[3].mxu0 }
 0x197   :  { %v1518_v27 = vpop.f32.mrb[2].mxu1  ;;  %v1485_v28 = vadd.f32 %v1484_v26, %v1483_v25  ;;  %v917_v26 = vld [vmem:[#allocation13 + $0x180] sm:$0xff] }
 0x198   :  { %v1519_v29 = vpop.f32.mrb[3].mxu1 }
 0x199   :  { %v1520_v30 = vadd.f32 %v1519_v29, %v1518_v27  ;;  %v487_v31 = vadd.f32 %v1485_v28, %v417_v24  ;;  %v926_v24 = vld [vmem:[#allocation13 + $0x1c8] sm:$0xff]  ;;  %v925_v27 = vld [vmem:[#allocation13 + $0x1c0] sm:$0xff] }
 0x19a   :  { %v1845_v25 = vpack.c.bf16 %v926_v24, %v918_v23  ;;  %v1847_v28 = vpack.c.bf16 %v925_v27, %v917_v26  ;;  %v934_v29 = vld [vmem:[#allocation13 + $0x208] sm:$0xff]  ;;  %v943_v26 = vld [vmem:[#allocation13 + $0x250] sm:$0xff]  ;;  %v952_v27 = vld [vmem:[#allocation13 + $0x298] sm:$0xff] }
 0x19b   :  { %v557_v32 = vadd.f32 %v1520_v30, %v487_v31  ;;  %v942_v30 = vld [vmem:[#allocation13 + $0x248] sm:$0xff] }
 0x19c   :  { %v1849_v31 = vpack.c.bf16 %v942_v30, %v934_v29 }
 0x19d   :  { %v560_v34 = vmax.f32 %v557_v32, 0.0  ;;  %v933_v32 = vld [vmem:[#allocation13 + $0x200] sm:$0xff] }
 0x19f   :  { %1588 = vmatmul.mubr.f32.vlgmr.msra.gmra.mrb[4].mxu0 %v560_v34  ;;  %v941_v34 = vld [vmem:[#allocation13 + $0x240] sm:$0xff] }
 0x1a0   :  { %1622 = vmatprep.mubr.msk.f32.mxu0 %vm2228_vm0, %v2229_v33  ;;  %1811 = vmatpush3.bf16.msra.mxu0 %v1810_v41  ;;  %v1851_v35 = vpack.c.bf16 %v941_v34, %v933_v32  ;;  %v1855_v41 = vpack.c.bf16 %v957_v40, %v949_v39  ;;  %v959_v32 = vld [vmem:[#allocation13 + $0x2d0] sm:$0xff]  ;;  %v968_v34 = vld [vmem:[#allocation13 + $0x318] sm:$0xff] }
 0x1a1   :  { %1812 = vmatprep.subr.bf16.mxu0 %v2227_v11  ;;  %v975_v39 = vld [vmem:[#allocation13 + $0x350] sm:$0xff] }
 0x1a4   :  { %1814 = vmatpush3.bf16.msra.mxu0 %v1813_v43  ;;  %v974_v43 = vld [vmem:[#allocation13 + $0x348] sm:$0xff] }
 0x1a5   :  { %1815 = vmatprep.subr.bf16.mxu0 %v2227_v11 }
 0x1a8   :  { %1817 = vmatpush3.bf16.msra.mxu0 %v1816_v50  ;;  %v690_v50 = vsub.s32 0, %v2429_v49 }
 0x1a9   :  { %1818 = vmatprep.subr.bf16.mxu0 %v2227_v11 }
 0x1ac   :  { %1820 = vmatpush3.bf16.msra.mxu0 %v1819_v53  ;;  %v691_v53 = vrot.slane %v686_v51, %v690_v50 }
 0x1ad   :  { %1821 = vmatprep.subr.bf16.mxu0 %v2227_v11 }
 0x1b0   :  { %1823 = vmatpush3.bf16.msra.mxu0 %v1822_v56 }
 0x1b1   :  { %1824 = vmatprep.subr.bf16.mxu0 %v2227_v11 }
 0x1b4   :  { %1826 = vmatpush3.bf16.msra.mxu0 %v1825_v59 }
 0x1b5   :  { %1827 = vmatprep.subr.bf16.mxu0 %v2227_v11 }
 0x1b8   :  { %1829 = vmatpush3.bf16.msra.mxu0 %v1828_v62  ;;  %v871_v62 = vld [vmem:[#allocation13 + $0x10] sm:$0xff] }
 0x1b9   :  { %1830 = vmatprep.subr.bf16.mxu0 %v2227_v11  ;;  %v902_v11 = vld [vmem:[#allocation13 + $0x108] sm:$0xff]  ;;  %v1867_v4 = vpack.c.bf16 %v879_v63, %v871_v62  ;;  %v1380_v62 = vld [vmem:[%s2510_s9] ss:$0 sm:$0xff]  ;;  %v873_v63 = vld [vmem:[#allocation13 + $0x20] sm:$0xff]  ;;  %s2230_s9 = smov [#allocation15]  }
 0x1ba   :  { %v1841_v19 = vpack.c.bf16 %v910_v18, %v902_v11  ;;  %s1349_s2 = sshll.u32 %s2230_s9, 4  ;;  %s1350_s2 = int_to_ptr.vmem [resolvable:$true] %s1349_s2 }
 0x1bb   :  { %s2136_s30 = scalar_lea.vmem %s1350_s2, 128  ;;  %p2141_p1 = scmp.lt.s32.totalorder %s1350_s2, %s1350_s2 }
 0x1bc   :  { %1832 = vmatpush3.bf16.msra.mxu0 %v1831_v1  ;;  %v888_v1 = vld [vmem:[#allocation13 + $0x98] sm:$0xff]  ;;  %p2137_p0 = scmp.ne.s32.totalorder %s1350_s2, %s2136_s30  ;;  %p2142_p2 = scmp.lt.s32.totalorder %s2136_s30, %s2136_s30 }
 0x1bd   :  { %1866 = vmatprep.subr.bf16.mxu0 %v1865_v9  ;;  %v1869_v6 = vpack.c.bf16 %v896_v2, %v888_v1  ;;  %v904_v9 = vld [vmem:[#allocation13 + $0x118] sm:$0xff]  ;;  %v875_v1 = vld [vmem:[#allocation13 + $0x30] sm:$0xff] }
 0x1be   :  { %v883_v2 = vld [vmem:[#allocation13 + $0x70] sm:$0xff]  ;;  %p2143_p3 = por %p2142_p2, %p2141_p1 }
 0x1c0   :  { %p2144_p4 = pnand %p2143_p3, %p2137_p0 }
 0x272   :  { %v650_v45 = vpop.f32.mrb[4].mxu0 }
 0x273   :  { %v651_v46 = vadd.f32 %v1379_v44, %v650_v45  ;;  %v1589_v47 = vpop.f32.mrb[5].mxu0  ;;  %v1857_v44 = vpack.c.bf16 %v974_v43, %v966_v42  ;;  %v965_v45 = vld [vmem:[#allocation13 + $0x300] sm:$0xff]  ;;  %v990_v42 = vld [vmem:[#allocation13 + $0x3c8] sm:$0xff]  ;;  %v984_v43 = vld [vmem:[#allocation13 + $0x398] sm:$0xff] }
 0x275   :  { %763 = vmatmul.mubr.f32.vlgmr.msra.gmra.mrb[4].mxu1 %v651_v46  ;;  %v973_v46 = vld [vmem:[#allocation13 + $0x340] sm:$0xff] }
 0x276   :  { %1103 = vmatprep.mubr.f32.mxu1 %v2229_v33  ;;  %1836 = vmatpush1.bf16.msra.mxu1 %v1835_v10  ;;  %v1859_v47 = vpack.c.bf16 %v973_v46, %v965_v45  ;;  %v912_v10 = vld [vmem:[#allocation13 + $0x158] sm:$0xff]  ;;  %v981_v46 = vld [vmem:[#allocation13 + $0x380] sm:$0xff] }
 0x277   :  { %1838 = vmatprep.subr.bf16.mxu1 %v1837_v14  ;;  %v1873_v13 = vpack.c.bf16 %v912_v10, %v904_v9  ;;  %v903_v14 = vld [vmem:[#allocation13 + $0x110] sm:$0xff]  ;;  %v992_v45 = vld [vmem:[#allocation13 + $0x3d8] sm:$0xff] }
 0x278   :  { %v1875_v11 = vpack.c.bf16 %v911_v15, %v903_v14  ;;  %v1893_v48 = vpack.c.bf16 %v992_v45, %v984_v43  ;;  %v897_v14 = vld [vmem:[#allocation13 + $0xe0] sm:$0xff]  ;;  %v931_v43 = vld [vmem:[#allocation13 + $0x1f0] sm:$0xff]  ;;  %v946_v45 = vld [vmem:[#allocation13 + $0x268] sm:$0xff] }
 0x27a   :  { %1840 = vmatpush1.bf16.msra.mxu1 %v1839_v17  ;;  %v928_v17 = vld [vmem:[#allocation13 + $0x1d8] sm:$0xff] }
 0x27b   :  { %1842 = vmatprep.subr.bf16.mxu1 %v1841_v19  ;;  %v1877_v18 = vpack.c.bf16 %v928_v17, %v920_v16  ;;  %v919_v19 = vld [vmem:[#allocation13 + $0x190] sm:$0xff] }
 0x27c   :  { %v1879_v23 = vpack.c.bf16 %v927_v20, %v919_v19  ;;  %v906_v19 = vld [vmem:[#allocation13 + $0x128] sm:$0xff] }
 0x27d   :  { %v914_v20 = vld [vmem:[#allocation13 + $0x168] sm:$0xff] }
 0x27e   :  { %1844 = vmatpush1.bf16.msra.mxu1 %v1843_v22  ;;  %v944_v22 = vld [vmem:[#allocation13 + $0x258] sm:$0xff] }
 0x27f   :  { %1846 = vmatprep.subr.bf16.mxu1 %v1845_v25  ;;  %v1881_v24 = vpack.c.bf16 %v944_v22, %v936_v21  ;;  %v935_v25 = vld [vmem:[#allocation13 + $0x210] sm:$0xff]  ;;  %v908_v21 = vld [vmem:[#allocation13 + $0x138] sm:$0xff] }
 0x280   :  { %v1883_v29 = vpack.c.bf16 %v943_v26, %v935_v25  ;;  %v916_v22 = vld [vmem:[#allocation13 + $0x178] sm:$0xff]  ;;  %v905_v25 = vld [vmem:[#allocation13 + $0x120] sm:$0xff] }
 0x281   :  { %v913_v26 = vld [vmem:[#allocation13 + $0x160] sm:$0xff] }
 0x282   :  { %1848 = vmatpush1.bf16.msra.mxu1 %v1847_v28  ;;  %v960_v28 = vld [vmem:[#allocation13 + $0x2d8] sm:$0xff] }
 0x283   :  { %1850 = vmatprep.subr.bf16.mxu1 %v1849_v31  ;;  %v1885_v30 = vpack.c.bf16 %v960_v28, %v952_v27  ;;  %v951_v31 = vld [vmem:[#allocation13 + $0x290] sm:$0xff]  ;;  %v1905_v27 = vpack.c.bf16 %v914_v20, %v906_v19  ;;  %v1937_v28 = vpack.c.bf16 %v916_v22, %v908_v21  ;;  %v986_v19 = vld [vmem:[#allocation13 + $0x3a8] sm:$0xff]  ;;  %v988_v21 = vld [vmem:[#allocation13 + $0x3b8] sm:$0xff] }
 0x284   :  { %v1887_v36 = vpack.c.bf16 %v959_v32, %v951_v31  ;;  %v922_v31 = vld [vmem:[#allocation13 + $0x1a8] sm:$0xff]  ;;  %v996_v22 = vld [vmem:[#allocation13 + $0x3f8] sm:$0xff] }
 0x285   :  { %v930_v32 = vld [vmem:[#allocation13 + $0x1e8] sm:$0xff] }
 0x286   :  { %1852 = vmatpush1.bf16.msra.mxu1 %v1851_v35  ;;  %v976_v35 = vld [vmem:[#allocation13 + $0x358] sm:$0xff]  ;;  %v994_v20 = vld [vmem:[#allocation13 + $0x3e8] sm:$0xff] }
 0x287   :  { %1854 = vmatprep.subr.bf16.mxu1 %v1853_v38  ;;  %v1889_v37 = vpack.c.bf16 %v976_v35, %v968_v34  ;;  %v967_v38 = vld [vmem:[#allocation13 + $0x310] sm:$0xff]  ;;  %v924_v34 = vld [vmem:[#allocation13 + $0x1b8] sm:$0xff] }
 0x288   :  { %v1891_v40 = vpack.c.bf16 %v975_v39, %v967_v38  ;;  %v932_v35 = vld [vmem:[#allocation13 + $0x1f8] sm:$0xff]  ;;  %v921_v38 = vld [vmem:[#allocation13 + $0x1a0] sm:$0xff] }
 0x289   :  { %v929_v39 = vld [vmem:[#allocation13 + $0x1e0] sm:$0xff] }
 0x28a   :  { %1856 = vmatpush1.bf16.msra.mxu1 %v1855_v41  ;;  %v982_v41 = vld [vmem:[#allocation13 + $0x388] sm:$0xff] }
 0x28b   :  { %1858 = vmatprep.subr.bf16.mxu1 %v1857_v44  ;;  %v1861_v44 = vpack.c.bf16 %v990_v42, %v982_v41  ;;  %v1941_v41 = vpack.c.bf16 %v932_v35, %v924_v34  ;;  %v923_v42 = vld [vmem:[#allocation13 + $0x1b0] sm:$0xff] }
 0x28e   :  { %1860 = vmatpush1.bf16.msra.mxu1 %v1859_v47  ;;  %v989_v47 = vld [vmem:[#allocation13 + $0x3c0] sm:$0xff] }
 0x28f   :  { %v1863_v51 = vpack.c.bf16 %v989_v47, %v981_v46  ;;  %1862 = vmatprep.subr.bf16.mxu1 %v1861_v44  ;;  %v938_v44 = vld [vmem:[#allocation13 + $0x228] sm:$0xff]  ;;  %v940_v46 = vld [vmem:[#allocation13 + $0x238] sm:$0xff] }
 0x290   :  { %v948_v47 = vld [vmem:[#allocation13 + $0x278] sm:$0xff] }
 0x292   :  { %1864 = vmatpush1.bf16.msra.mxu1 %v1863_v51  ;;  %v937_v51 = vld [vmem:[#allocation13 + $0x220] sm:$0xff] }
 0x348   :  { %v764_v55 = vpop.f32.mrb[4].mxu1 }
 0x349   :  { %v765_v56 = vadd.f32 %v764_v55, %v691_v53  ;;  %v766_v57 = vpop.f32.mrb[5].mxu1  ;;  %v983_v53 = vld [vmem:[#allocation13 + $0x390] sm:$0xff] }
 0x34a   :  { %v767_v58 = vadd.f32 %v766_v57, %v695_v54  ;;  %v991_v54 = vld [vmem:[#allocation13 + $0x3d0] sm:$0xff]  ;;  %v882_v57 = vld [vmem:[#allocation13 + $0x68] sm:$0xff] }
 0x34b   :  { %1331 = vst [vmem:[#allocation15] sm:$0xff] %v765_v56  ;;  %v1895_v55 = vpack.c.bf16 %v991_v54, %v983_v53  ;;  %v945_v53 = vld [vmem:[#allocation13 + $0x260] sm:$0xff]  ;;  %v1913_v54 = vpack.c.bf16 %v946_v45, %v938_v44 }
 0x34c   :  { %v770_v59 = vmul.f32 0.5, %v767_v58  ;;  %1332 = vst [vmem:[#allocation17] sm:$0xff] %v767_v58  ;;  %v876_v58 = vld [vmem:[#allocation13 + $0x38] sm:$0xff] }
 0x34e   :  { %v771_v60 = vmul.f32 1.442695, %v770_v59 }
 0x350   :  { %1980 = vpow2.f32 %v771_v60  ;;  %v884_v60 = vld [vmem:[#allocation13 + $0x78] sm:$0xff] }
 0x35a   :  { %v1981_v0 = vpop.eup %1980 }
 0x35b   :  { %v773_v3 = vmul.f32 %v1981_v0, %v769_v61  ;;  %v1929_v61 = vpack.c.bf16 %v884_v60, %v876_v58  ;;  %v881_v0 = vld [vmem:[#allocation13 + $0x60] sm:$0xff]  ;;  %v954_v58 = vld [vmem:[#allocation13 + $0x2a8] sm:$0xff]  ;;  %v956_v60 = vld [vmem:[#allocation13 + $0x2b8] sm:$0xff] }
 0x35c   :  { %v1899_v10 = vpack.c.bf16 %v881_v0, %v873_v63  ;;  %v953_v0 = vld [vmem:[#allocation13 + $0x2a0] sm:$0xff] }
 0x35d   :  { %v774_v5 = vadd.f32 %v773_v3, %v765_v56  ;;  %v874_v56 = vld [vmem:[#allocation13 + $0x28] sm:$0xff] }
 0x35e   :  { %v1897_v59 = vpack.c.bf16 %v882_v57, %v874_v56  ;;  %v890_v3 = vld [vmem:[#allocation13 + $0xa8] sm:$0xff]  ;;  %v939_v56 = vld [vmem:[#allocation13 + $0x230] sm:$0xff] }
 0x35f   :  { %1623 = vmatmul.mubr.f32.vlgmr.msra.gmra.mrb[6].mxu0 %v774_v5  ;;  %v898_v5 = vld [vmem:[#allocation13 + $0xe8] sm:$0xff]  ;;  %v947_v57 = vld [vmem:[#allocation13 + $0x270] sm:$0xff] }
 0x360   :  { %1868 = vmatpush1.bf16.msra.mxu0 %v1867_v4  ;;  %1174 = vmatprep.mubr.f32.mxu0 %v2229_v33  ;;  %v1901_v16 = vpack.c.bf16 %v898_v5, %v890_v3  ;;  %v1947_v63 = vpack.c.bf16 %v947_v57, %v939_v56  ;;  %v963_v5 = vld [vmem:[#allocation13 + $0x2f0] sm:$0xff] }
 0x361   :  { %1870 = vmatprep.subr.bf16.mxu0 %v1869_v6  ;;  %1898 = vmatprep.subr.bf16.mxu1 %v1897_v59  ;;  %v892_v6 = vld [vmem:[#allocation13 + $0xb8] sm:$0xff]  ;;  %v962_v59 = vld [vmem:[#allocation13 + $0x2e8] sm:$0xff] }
 0x362   :  { %v1933_v17 = vpack.c.bf16 %v900_v7, %v892_v6  ;;  %v970_v6 = vld [vmem:[#allocation13 + $0x328] sm:$0xff] }
 0x363   :  { %v978_v7 = vld [vmem:[#allocation13 + $0x368] sm:$0xff] }
 0x364   :  { %1872 = vmatpush1.bf16.msra.mxu0 %v1871_v12  ;;  %v1931_v12 = vpack.c.bf16 %v883_v2, %v875_v1  ;;  %v961_v1 = vld [vmem:[#allocation13 + $0x2e0] sm:$0xff]  ;;  %v1917_v2 = vpack.c.bf16 %v962_v59, %v954_v58 }
 0x365   :  { %1874 = vmatprep.subr.bf16.mxu0 %v1873_v13  ;;  %v889_v13 = vld [vmem:[#allocation13 + $0xa0] sm:$0xff] }
 0x368   :  { %1876 = vmatpush1.bf16.msra.mxu0 %v1875_v11  ;;  %v891_v11 = vld [vmem:[#allocation13 + $0xb0] sm:$0xff] }
 0x369   :  { %1878 = vmatprep.subr.bf16.mxu0 %v1877_v18  ;;  %v899_v18 = vld [vmem:[#allocation13 + $0xf0] sm:$0xff] }
 0x36c   :  { %1880 = vmatpush1.bf16.msra.mxu0 %v1879_v23  ;;  %v1903_v23 = vpack.c.bf16 %v897_v14, %v889_v13  ;;  %v969_v13 = vld [vmem:[#allocation13 + $0x320] sm:$0xff] }
 0x36d   :  { %1882 = vmatprep.subr.bf16.mxu0 %v1881_v24  ;;  %v1935_v24 = vpack.c.bf16 %v899_v18, %v891_v11  ;;  %v977_v14 = vld [vmem:[#allocation13 + $0x360] sm:$0xff]  ;;  %v971_v11 = vld [vmem:[#allocation13 + $0x330] sm:$0xff] }
 0x36e   :  { %v979_v18 = vld [vmem:[#allocation13 + $0x370] sm:$0xff] }
 0x370   :  { %1884 = vmatpush1.bf16.msra.mxu0 %v1883_v29  ;;  %v907_v29 = vld [vmem:[#allocation13 + $0x130] sm:$0xff] }
 0x371   :  { %1886 = vmatprep.subr.bf16.mxu0 %v1885_v30  ;;  %v915_v30 = vld [vmem:[#allocation13 + $0x170] sm:$0xff] }
 0x374   :  { %1888 = vmatpush1.bf16.msra.mxu0 %v1887_v36  ;;  %v1907_v36 = vpack.c.bf16 %v913_v26, %v905_v25  ;;  %v985_v25 = vld [vmem:[#allocation13 + $0x3a0] sm:$0xff]  ;;  %v1925_v26 = vpack.c.bf16 %v994_v20, %v986_v19 }
 0x375   :  { %1890 = vmatprep.subr.bf16.mxu0 %v1889_v37  ;;  %v1939_v37 = vpack.c.bf16 %v915_v30, %v907_v29  ;;  %v987_v29 = vld [vmem:[#allocation13 + $0x3b0] sm:$0xff] }
 0x376   :  { %v995_v30 = vld [vmem:[#allocation13 + $0x3f0] sm:$0xff] }
 0x378   :  { %1892 = vmatpush1.bf16.msra.mxu0 %v1891_v40  ;;  %v1909_v40 = vpack.c.bf16 %v930_v32, %v922_v31  ;;  %v1959_v32 = vpack.c.bf16 %v995_v30, %v987_v29 }
 0x379   :  { %1894 = vmatprep.subr.bf16.mxu0 %v1893_v48  ;;  %v1911_v48 = vpack.c.bf16 %v929_v39, %v921_v38 }
 0x37c   :  { %1896 = vmatpush1.bf16.msra.mxu0 %v1895_v55  ;;  %v1945_v55 = vpack.c.bf16 %v948_v47, %v940_v46 }
 0x37d   :  { %1930 = vmatprep.subr.bf16.mxu0 %v1929_v61  ;;  %v964_v61 = vld [vmem:[#allocation13 + $0x2f8] sm:$0xff] }
 0x37e   :  { %v1949_v3 = vpack.c.bf16 %v964_v61, %v956_v60 }
 0x432   :  { %v864_v4 = vpop.f32.mrb[6].mxu0 }
 0x433   :  { %v865_v8 = vadd.f32 %v1380_v62, %v864_v4  ;;  %v1624_v9 = vpop.f32.mrb[7].mxu0  ;;  %v1915_v62 = vpack.c.bf16 %v945_v53, %v937_v51  ;;  %v955_v4 = vld [vmem:[#allocation13 + $0x2b0] sm:$0xff] }
 0x434   :  { %v980_v9 = vld [vmem:[#allocation13 + $0x378] sm:$0xff] }
 0x435   :  { %v2444_v15 = vmax.f32 %v865_v8, 0.0  ;;  %v972_v8 = vld [vmem:[#allocation13 + $0x338] sm:$0xff] }
 0x437   :  { %1104 = vmatmul.mubr.f32.vlgmr.msra.gmra.mrb[6].mxu1 %v2444_v15  ;;  %1175 = vmatmul.mubr.f32.vlgmr.msra.gmra.mrb[8].mxu0 %v2444_v15 }
 0x438   :  { %1900 = vmatpush1.bf16.msra.mxu1 %v1899_v10  ;;  %1932 = vmatpush1.bf16.msra.mxu0 %v1931_v12  ;;  %v1919_v10 = vpack.c.bf16 %v961_v1, %v953_v0  ;;  %v1951_v12 = vpack.c.bf16 %v963_v5, %v955_v4 }
 0x439   :  { %1902 = vmatprep.subr.bf16.mxu1 %v1901_v16  ;;  %1934 = vmatprep.subr.bf16.mxu0 %v1933_v17  ;;  %v1921_v16 = vpack.c.bf16 %v978_v7, %v970_v6  ;;  %v1953_v17 = vpack.c.bf16 %v980_v9, %v972_v8 }
 0x43a   :  { %1245 = vmatprep.mubr.f32.mxu1 %v2229_v33  ;;  %1316 = vmatprep.mubr.f32.mxu0 %v2229_v33  ;;  %v1943_v33 = vpack.c.bf16 %v931_v43, %v923_v42 }
 0x43c   :  { %1904 = vmatpush1.bf16.msra.mxu1 %v1903_v23  ;;  %1936 = vmatpush1.bf16.msra.mxu0 %v1935_v24  ;;  %v1923_v23 = vpack.c.bf16 %v977_v14, %v969_v13  ;;  %v1955_v24 = vpack.c.bf16 %v979_v18, %v971_v11 }
 0x43d   :  { %1906 = vmatprep.subr.bf16.mxu1 %v1905_v27  ;;  %1938 = vmatprep.subr.bf16.mxu0 %v1937_v28  ;;  %v1957_v27 = vpack.c.bf16 %v996_v22, %v988_v21  ;;  %v993_v28 = vld [vmem:[#allocation13 + $0x3e0] sm:$0xff] }
 0x43e   :  { %v1927_v31 = vpack.c.bf16 %v993_v28, %v985_v25 }
 0x440   :  { %1908 = vmatpush1.bf16.msra.mxu1 %v1907_v36  ;;  %1940 = vmatpush1.bf16.msra.mxu0 %v1939_v37 }
 0x441   :  { %1910 = vmatprep.subr.bf16.mxu1 %v1909_v40  ;;  %1942 = vmatprep.subr.bf16.mxu0 %v1941_v41 }
 0x444   :  { %1912 = vmatpush1.bf16.msra.mxu1 %v1911_v48  ;;  %1944 = vmatpush1.bf16.msra.mxu0 %v1943_v33 }
 0x445   :  { %1914 = vmatprep.subr.bf16.mxu1 %v1913_v54  ;;  %1946 = vmatprep.subr.bf16.mxu0 %v1945_v55 }
 0x448   :  { %1916 = vmatpush1.bf16.msra.mxu1 %v1915_v62  ;;  %1948 = vmatpush1.bf16.msra.mxu0 %v1947_v63 }
 0x449   :  { %1918 = vmatprep.subr.bf16.mxu1 %v1917_v2  ;;  %1950 = vmatprep.subr.bf16.mxu0 %v1949_v3 }
 0x44c   :  { %1920 = vmatpush1.bf16.msra.mxu1 %v1919_v10  ;;  %1952 = vmatpush1.bf16.msra.mxu0 %v1951_v12 }
 0x44d   :  { %1922 = vmatprep.subr.bf16.mxu1 %v1921_v16  ;;  %1954 = vmatprep.subr.bf16.mxu0 %v1953_v17 }
 0x450   :  { %1924 = vmatpush1.bf16.msra.mxu1 %v1923_v23  ;;  %1956 = vmatpush1.bf16.msra.mxu0 %v1955_v24 }
 0x451   :  { %1926 = vmatprep.subr.bf16.mxu1 %v1925_v26  ;;  %1958 = vmatprep.subr.bf16.mxu0 %v1957_v27 }
 0x454   :  { %1928 = vmatpush1.bf16.msra.mxu1 %v1927_v31  ;;  %1960 = vmatpush1.bf16.msra.mxu0 %v1959_v32 }
 0x457   :  { %1246 = vmatmul.mubr.f32.vlgmr.msra.gmra.mrb[8].mxu1 %v2444_v15  ;;  %1317 = vmatmul.mubr.f32.vlgmr.msra.gmra.mrb[10].mxu0 %v2444_v15 }
 0x458   :  { %2147 = shalt.err (!%p2144_p4)
}
 0x459   :  { %s2148_s19 = scalar_lea.hbm %s2514_s13, 128 }
 0x45a   :  { %p2149_p5 = scmp.ne.s32.totalorder %s2514_s13, %s2148_s19  ;;  %p2152_p6 = scmp.lt.u32.totalorder %s2148_s19, %s2514_s13 }
 0x45c   :  { %p2154_p7 = pnand %p2152_p6, %p2149_p5 }
 0x45e   :  { %2157 = shalt.err (!%p2154_p7)
}
 0x45f   :  { %1352 = dma.vmem_to_hbm [thread:$0]  %s1350_s2, 128, %s2514_s13, [#allocation16]  }
 0x460   :  { %s2231_s27 = smov [#allocation17]  }
 0x461   :  { %s1359_s15 = sshll.u32 %s2231_s27, 4  ;;  %s1360_s15 = int_to_ptr.vmem [resolvable:$true] %s1359_s15 }
 0x462   :  { %s2158_s16 = scalar_lea.vmem %s1360_s15, 128  ;;  %p2163_p9 = scmp.lt.s32.totalorder %s1360_s15, %s1360_s15 }
 0x463   :  { %p2159_p8 = scmp.ne.s32.totalorder %s1360_s15, %s2158_s16  ;;  %p2164_p10 = scmp.lt.s32.totalorder %s2158_s16, %s2158_s16 }
 0x465   :  { %p2165_p11 = por %p2164_p10, %p2163_p9 }
 0x467   :  { %p2166_p12 = pnand %p2165_p11, %p2159_p8 }
 0x469   :  { %2169 = shalt.err (!%p2166_p12)
}
 0x46a   :  { %s2170_s8 = scalar_lea.hbm %s2515_s14, 128 }
 0x46b   :  { %p2171_p13 = scmp.ne.s32.totalorder %s2515_s14, %s2170_s8  ;;  %p2174_p0 = scmp.lt.u32.totalorder %s2170_s8, %s2515_s14 }
 0x46d   :  { %p2176_p1 = pnand %p2174_p0, %p2171_p13 }
 0x46f   :  { %2179 = shalt.err (!%p2176_p1)
}
 0x470   :  { %1362 = dma.vmem_to_hbm [thread:$0]  %s1360_s15, 128, %s2515_s14, [#allocation16]   ;;  %v1009_v15 = vsub.s32 2, %v2429_v49  ;;  %v997_v34 = vld [vmem:[%s2512_s11] sm:$0xff]  ;;  %v1013_v35 = vsub.s32 3, %v2429_v49  ;;  %v1017_v48 = vsub.s32 4, %v2429_v49 }
 0x471   :  { %v1002_v36 = vrot.slane %v997_v34, %v690_v50  ;;  %v1006_v38 = vrot.slane %v997_v34, %v694_v52  ;;  %v1025_v50 = vsub.s32 6, %v2429_v49  ;;  %v1021_v33 = vsub.s32 5, %v2429_v49  ;;  %s2232_s11 = smov [#allocation14]  }
 0x472   :  { %v1010_v37 = vrot.slane %v997_v34, %v1009_v15  ;;  %v1014_v39 = vrot.slane %v997_v34, %v1013_v35  ;;  %v1029_v52 = vsub.s32 7, %v2429_v49  ;;  %v1018_v51 = vrot.slane %v997_v34, %v1017_v48  ;;  %s1339_s14 = sshll.u32 %s2232_s11, 4  ;;  %s1340_s14 = int_to_ptr.vmem [resolvable:$true] %s1339_s14 }
 0x473   :  { %v1026_v53 = vrot.slane %v997_v34, %v1025_v50  ;;  %v1022_v54 = vrot.slane %v997_v34, %v1021_v33  ;;  %s2180_s7 = scalar_lea.vmem %s1340_s14, 1024  ;;  %p2185_p3 = scmp.lt.s32.totalorder %s1340_s14, %s1340_s14 }
 0x474   :  { %v1030_v55 = vrot.slane %v997_v34, %v1029_v52  ;;  %p2181_p2 = scmp.ne.s32.totalorder %s1340_s14, %s2180_s7  ;;  %p2186_p4 = scmp.lt.s32.totalorder %s2180_s7, %s2180_s7 }
 0x476   :  { %p2187_p5 = por %p2186_p4, %p2185_p3 }
 0x478   :  { %p2188_p6 = pnand %p2187_p5, %p2181_p2 }
 0x50a   :  { %v1105_v40 = vpop.f32.mrb[6].mxu1  ;;  %v1176_v41 = vpop.f32.mrb[8].mxu0 }
 0x50b   :  { %v1106_v42 = vadd.f32 %v1105_v40, %v1002_v36  ;;  %v1177_v43 = vadd.f32 %v1176_v41, %v1010_v37  ;;  %v1107_v44 = vpop.f32.mrb[7].mxu1  ;;  %v1178_v45 = vpop.f32.mrb[9].mxu0 }
 0x50c   :  { %v1108_v46 = vadd.f32 %v1107_v44, %v1006_v38  ;;  %v1179_v47 = vadd.f32 %v1178_v45, %v1014_v39 }
 0x50d   :  { %1323 = vst [vmem:[#allocation14] sm:$0xff] %v1106_v42  ;;  %1325 = vst [vmem:[#allocation14 + $0x10] sm:$0xff] %v1177_v43 }
 0x50e   :  { %1324 = vst [vmem:[#allocation14 + $0x8] sm:$0xff] %v1108_v46  ;;  %1326 = vst [vmem:[#allocation14 + $0x18] sm:$0xff] %v1179_v47 }
 0x52a   :  { %v1247_v56 = vpop.f32.mrb[8].mxu1  ;;  %v1318_v57 = vpop.f32.mrb[10].mxu0 }
 0x52b   :  { %v1248_v58 = vadd.f32 %v1247_v56, %v1018_v51  ;;  %v1319_v59 = vadd.f32 %v1318_v57, %v1026_v53  ;;  %v1249_v60 = vpop.f32.mrb[9].mxu1  ;;  %v1320_v61 = vpop.f32.mrb[11].mxu0 }
 0x52c   :  { %v1250_v62 = vadd.f32 %v1249_v60, %v1022_v54  ;;  %v1321_v63 = vadd.f32 %v1320_v61, %v1030_v55 }
 0x52d   :  { %1327 = vst [vmem:[#allocation14 + $0x20] sm:$0xff] %v1248_v58  ;;  %1329 = vst [vmem:[#allocation14 + $0x30] sm:$0xff] %v1319_v59 }
 0x52e   :  { %1328 = vst [vmem:[#allocation14 + $0x28] sm:$0xff] %v1250_v62  ;;  %1330 = vst [vmem:[#allocation14 + $0x38] sm:$0xff] %v1321_v63 }
 0x52f   :  { %2191 = shalt.err (!%p2188_p6)
}
 0x530   :  { %s2192_s2 = scalar_lea.hbm %s2513_s12, 1024 }
 0x531   :  { %p2193_p7 = scmp.ne.s32.totalorder %s2513_s12, %s2192_s2  ;;  %p2196_p8 = scmp.lt.u32.totalorder %s2192_s2, %s2513_s12 }
 0x533   :  { %p2198_p9 = pnand %p2196_p8, %p2193_p7 }
 0x535   :  { %2201 = shalt.err (!%p2198_p9)
}
 0x536   :  { %1342 = dma.vmem_to_hbm [thread:$0]  %s1340_s14, 1024, %s2513_s12, [#allocation4]  }
 0x537   :  { %2210 = dma.done.wait [#allocation4], 1024  }
 0x538   :  { %2211 = vsyncadd [#allocation4], 4294966272 }
 0x539   :  { %2212 = dma.done.wait [#allocation16], 256  }
 0x53a   :  { %2213 = vsyncadd [#allocation16], 4294967040 }
 0x53b   :  { %1372 = vsyncpa [#allocation3], 1 }
 0x53c   :  { %1373 = vsyncpa [#allocation6], 1 }
 0x53d   :  { %1374 = vsyncpa [#allocation9], 1 }
 0x53e   :  { %1375 = vsyncpa [#allocation12], 1 }
 0x53f   :  { %1376 = vsyncpa [#allocation4], 1 }
 0x540   :  { %1377 = vsyncpa [#allocation16], 1 }

</bundles_post_ra>
